<compile_context>
chip_gen: v7x
topology: tpu7x:2x2x1
jax: 0.10.0
libtpu: 0.0.40
codegen_flags: <defaults>
</compile_context>

<pallas_src>
import functools
import math

import jax
import jax.numpy as jnp
from jax.experimental import pallas as pl
from jax.experimental.pallas import tpu as pltpu

_VMEM_LIMIT = 48 * 1024 * 1024  # headroom-safe on v5e/v6e (128 MiB) and v7x (64 MiB)


# ----------------------------------------------------------------------------
# Pallas kernel 1: matmul + bias -> store y (bf16) + per-tile channel moments
# ----------------------------------------------------------------------------
def _matmul_bias_moments_kernel(a_ref, w_ref, b_ref, y_ref, part_ref):
    # a: (1, TS, Kd) bf16   w: (Kd, N) bf16   b: (1, N) f32
    # y: (1, TS, N)         part: (1, 1, 2, N) f32  (mean, mean of squares)
    y = jnp.dot(a_ref[0], w_ref[...], preferred_element_type=jnp.float32) + b_ref[...]
    m1 = jnp.mean(y, axis=0, keepdims=True)        # (1, N)
    m2 = jnp.mean(y * y, axis=0, keepdims=True)    # (1, N)
    part_ref[0, 0] = jnp.concatenate([m1, m2], axis=0)
    y_ref[0] = y.astype(y_ref.dtype)


# ----------------------------------------------------------------------------
# Pallas kernel 2: elementwise folded scale/shift + activation (lane-dense view)
# ----------------------------------------------------------------------------
def _affine_act_kernel(y_ref, scale_ref, shift_ref, o_ref, *, act):
    # y: (1, TR, L)   scale/shift: (1, 1, L)   o: (1, TR, L)
    y = y_ref[0].astype(jnp.float32) * scale_ref[0] + shift_ref[0]
    if act == "tanh":
        y = jnp.tanh(y)
    elif act == "relu":
        y = jnp.maximum(y, 0.0)
    o_ref[0] = y.astype(o_ref.dtype)


def _pick_row_tile(s, target, multiple=8):
    """Largest divisor of s that is <= target and a multiple of `multiple` (else s)."""
    for cand in range(min(target, s), multiple - 1, -1):
        if s % cand == 0 and cand % multiple == 0:
            return cand
    return s


def matmul_bias_moments(a, w, b, *, row_tile=1024, y_dtype=jnp.bfloat16):
    """y = a @ w + b (stored in y_dtype) and per-batch channel moments (B, 2, N)."""
    B, S, Kd = a.shape
    N = w.shape[1]
    ts = _pick_row_tile(S, row_tile)
    nt = S // ts
    y, part = pl.pallas_call(
        _matmul_bias_moments_kernel,
        out_shape=(jax.ShapeDtypeStruct((B, S, N), y_dtype),
                   jax.ShapeDtypeStruct((B, nt, 2, N), jnp.float32)),
        grid=(B, nt),
        in_specs=[
            pl.BlockSpec((1, ts, Kd), lambda b_, s_: (b_, s_, 0)),
            pl.BlockSpec((Kd, N), lambda b_, s_: (0, 0)),
            pl.BlockSpec((1, N), lambda b_, s_: (0, 0)),
        ],
        out_specs=(
            pl.BlockSpec((1, ts, N), lambda b_, s_: (b_, s_, 0)),
            pl.BlockSpec((1, 1, 2, N), lambda b_, s_: (b_, s_, 0, 0)),
        ),
        compiler_params=pltpu.CompilerParams(
            dimension_semantics=("parallel", "parallel"),
            vmem_limit_bytes=_VMEM_LIMIT),
    )(a, w, b.reshape(1, N).astype(jnp.float32))
    # tiles are equal-sized -> overall moments = mean of per-tile moments (tiny reduce).
    return y, part.mean(axis=1)   # (B, S, N), (B, 2, N)


def affine_act(y, scale, shift, act, *, row_tile=1024):
    """act(y * scale + shift) with per-(batch, channel) scale/shift.

    y: (B, S, N); scale/shift: (B, N).  Processes a lane-dense flattened view
    (B, S/r, r*N) when possible so loads/stores are unmasked full-width vst/vld.
    """
    B, S, N = y.shape
    r = 128 // math.gcd(N, 128)            # smallest r with (r*N) % 128 == 0
    if S % r == 0:
        L, Sr = r * N, S // r
        y_v = y.reshape(B, Sr, L)           # reshape of contiguous dims: no copy
        sc = jnp.tile(scale.astype(jnp.float32), (1, r)).reshape(B, 1, L)
        sh = jnp.tile(shift.astype(jnp.float32), (1, r)).reshape(B, 1, L)
    else:
        # TODO(synk): fallback keeps the narrow (masked-lane) layout when S % r != 0.
        r, L, Sr = 1, N, S
        y_v = y
        sc = scale.astype(jnp.float32).reshape(B, 1, N)
        sh = shift.astype(jnp.float32).reshape(B, 1, N)
    ts = _pick_row_tile(Sr, max(8, row_tile // r))
    nt = Sr // ts
    out = pl.pallas_call(
        functools.partial(_affine_act_kernel, act=act),
        out_shape=jax.ShapeDtypeStruct((B, Sr, L), jnp.float32),
        grid=(B, nt),
        in_specs=[
            pl.BlockSpec((1, ts, L), lambda b_, s_: (b_, s_, 0)),
            pl.BlockSpec((1, 1, L), lambda b_, s_: (b_, 0, 0)),
            pl.BlockSpec((1, 1, L), lambda b_, s_: (b_, 0, 0)),
        ],
        out_specs=pl.BlockSpec((1, ts, L), lambda b_, s_: (b_, s_, 0)),
        compiler_params=pltpu.CompilerParams(
            dimension_semantics=("parallel", "parallel"),
            vmem_limit_bytes=_VMEM_LIMIT),
    )(y_v, sc, sh)
    return out.reshape(B, S, N)


# ----------------------------------------------------------------------------
# Plain-JAX glue
# ----------------------------------------------------------------------------
def im2col_3x3x3_cl(x_cl):
    """x_cl: (B, D, H, W, C) -> patches (B*D*H*W, C*27), feature order (c, kd, kh, kw)."""
    B, D, H, W, C = x_cl.shape
    xp = jnp.pad(x_cl, ((0, 0), (1, 1), (1, 1), (1, 1), (0, 0)))
    cols = []
    for kd in range(3):
        for kh in range(3):
            for kw in range(3):
                cols.append(xp[:, kd:kd + D, kh:kh + H, kw:kw + W, :])
    p = jnp.stack(cols, axis=-1)                 # (B, D, H, W, C, 27)
    return p.reshape(B * D * H * W, C * 27)


def snake_deform_sample_cl(x_cl, offset, morph, kernel_size, extend_scope):
    """Snake coordinate map + trilinear sampling (channels-last, incremental accumulate).

    x_cl: (B, D, H, W, C); offset: (B, D, H, W, 3K) already tanh'd.
    Offset channel layout: [0:K] -> D-axis offsets, [K:2K] -> H-axis, [2K:3K] -> W-axis.
    Returns deformed features (B, D*H*W, K*C) in bf16, feature order (k, c).
    """
    B, D, H, W, C = x_cl.shape
    K = kernel_size
    center = K // 2
    off = offset.reshape(B, D, H, W, 3, K)

    def accumulate(o):  # center fixed at 0, swing accumulates outward
        new = [None] * K
        new[center] = jnp.zeros_like(o[..., center])
        for i in range(1, center + 1):
            new[center + i] = new[center + i - 1] + o[..., center + i]
            new[center - i] = new[center - i + 1] + o[..., center - i]
        return jnp.stack(new, axis=-1)

    acc_d = accumulate(off[..., 0, :])
    acc_h = accumulate(off[..., 1, :])
    acc_w = accumulate(off[..., 2, :])

    base_d = jnp.arange(D, dtype=jnp.float32)[None, :, None, None, None]
    base_h = jnp.arange(H, dtype=jnp.float32)[None, None, :, None, None]
    base_w = jnp.arange(W, dtype=jnp.float32)[None, None, None, :, None]
    spread = (jnp.arange(K, dtype=jnp.float32) - center)[None, None, None, None, :]

    es = jnp.float32(extend_scope)
    if morph == 0:        # kernel extends along D; offsets swing in H, W
        cd = base_d + spread
        ch = base_h + es * acc_h
        cw = base_w + es * acc_w
    elif morph == 1:      # kernel extends along H; offsets swing in D, W
        cd = base_d + es * acc_d
        ch = base_h + spread
        cw = base_w + es * acc_w
    else:                 # kernel extends along W; offsets swing in D, H
        cd = base_d + es * acc_d
        ch = base_h + es * acc_h
        cw = base_w + spread

    shp = (B, D, H, W, K)
    cd = jnp.broadcast_to(cd, shp)
    ch = jnp.broadcast_to(ch, shp)
    cw = jnp.broadcast_to(cw, shp)

    d0 = jnp.floor(cd); d1 = d0 + 1.0
    h0 = jnp.floor(ch); h1 = h0 + 1.0
    w0 = jnp.floor(cw); w1 = w0 + 1.0
    d0c = jnp.clip(d0, 0.0, D - 1); d1c = jnp.clip(d1, 0.0, D - 1)
    h0c = jnp.clip(h0, 0.0, H - 1); h1c = jnp.clip(h1, 0.0, H - 1)
    w0c = jnp.clip(w0, 0.0, W - 1); w1c = jnp.clip(w1, 0.0, W - 1)

    x_flat = x_cl.reshape(B, D * H * W, C)
    L = D * H * W * K

    def gather(di, hi, wi):
        idx = (di * (H * W) + hi * W + wi).astype(jnp.int32).reshape(B, L, 1)
        idx = jnp.broadcast_to(idx, (B, L, C))
        return jnp.take_along_axis(x_flat, idx, axis=1).reshape(B, D, H, W, K, C)

    wd0 = d1c - cd; wd1 = cd - d0c
    wh0 = h1c - ch; wh1 = ch - h0c
    ww0 = w1c - cw; ww1 = cw - w0c

    # incremental trilinear accumulation (avoids keeping 8 full corner tensors live)
    out = gather(d0c, h0c, w0c) * (wd0 * wh0 * ww0)[..., None]
    out = out + gather(d0c, h0c, w1c) * (wd0 * wh0 * ww1)[..., None]
    out = out + gather(d0c, h1c, w0c) * (wd0 * wh1 * ww0)[..., None]
    out = out + gather(d0c, h1c, w1c) * (wd0 * wh1 * ww1)[..., None]
    out = out + gather(d1c, h0c, w0c) * (wd1 * wh0 * ww0)[..., None]
    out = out + gather(d1c, h0c, w1c) * (wd1 * wh0 * ww1)[..., None]
    out = out + gather(d1c, h1c, w0c) * (wd1 * wh1 * ww0)[..., None]
    out = out + gather(d1c, h1c, w1c) * (wd1 * wh1 * ww1)[..., None]
    # (B, D, H, W, K, C) -> (B, S, K*C): already channels-last, no full-volume transpose.
    return out.reshape(B, D * H * W, K * C).astype(jnp.bfloat16)


def dsc_conv_forward(x, params, kernel_size=3, extend_scope=1.0, row_tile=1024):
    """DSCConv.forward: returns (dcn1x, dcn1y, dcn1z), each (B, C_out, D, H, W)."""
    B, C, D, H, W = x.shape
    K = kernel_size
    M = B * D * H * W
    names = ("x", "y", "z")

    # One channels-last relayout of the input, shared by im2col and the snake sampling.
    x_cl = x.transpose(0, 2, 3, 4, 1)                               # (B, D, H, W, C) f32

    # -------- offset stage: shared im2col + fused 3-branch conv (one matmul pass),
    #          batch-norm stats from the same pass, lane-dense affine + tanh pass -------
    patches = im2col_3x3x3_cl(x_cl.astype(jnp.bfloat16)).reshape(1, M, C * 27)
    w_off = jnp.concatenate(
        [params[n]["off_w"].transpose(1, 2, 3, 4, 0).reshape(C * 27, 3 * K)
         for n in names], axis=1).astype(jnp.bfloat16)              # (C*27, 3*3K)
    b_off = jnp.concatenate([params[n]["off_b"] for n in names])    # (9K,)
    gam = jnp.concatenate([params[n]["bn_gamma"] for n in names])
    bet = jnp.concatenate([params[n]["bn_beta"] for n in names])

    y_off, mom = matmul_bias_moments(patches, w_off, b_off, row_tile=row_tile)
    mom = mom[0]                                                    # (2, 9K)
    mean = mom[0]
    var = mom[1] - mean * mean                                      # batch stats (training-mode BN)
    scale = gam * jax.lax.rsqrt(var + 1e-5)
    shift = bet - mean * scale
    off_all = affine_act(y_off, scale[None, :], shift[None, :], "tanh",
                         row_tile=row_tile)                         # (1, M, 9K)
    off_all = off_all.reshape(B, D, H, W, 3 * 3 * K)

    # -------- per-branch: snake sampling + axis conv (one matmul pass) + GN + ReLU -----
    outs = []
    for bi, (name, morph) in enumerate(zip(names, (0, 1, 2))):
        p = params[name]
        O = p["conv_w"].shape[0]
        off_b = off_all[..., bi * 3 * K:(bi + 1) * 3 * K]           # (B, D, H, W, 3K)
        feat = snake_deform_sample_cl(x_cl, off_b, morph, K, extend_scope)  # (B, S, K*C) bf16
        w_dsc = p["conv_w"].transpose(2, 1, 0).reshape(K * C, O).astype(jnp.bfloat16)

        y_b, gmom = matmul_bias_moments(feat, w_dsc, p["conv_b"],
                                        row_tile=row_tile)          # (B,S,O), (B,2,O)
        G = O // 4
        cpg = O // G
        mean_g = gmom[:, 0].reshape(B, G, cpg).mean(-1)             # (B, G)
        msq_g = gmom[:, 1].reshape(B, G, cpg).mean(-1)
        var_g = msq_g - mean_g * mean_g
        inv_g = jax.lax.rsqrt(var_g + 1e-5)
        mean_c = jnp.repeat(mean_g, cpg, axis=1)                    # (B, O)
        inv_c = jnp.repeat(inv_g, cpg, axis=1)
        sc = inv_c * p["gn_gamma"][None, :]
        sh = p["gn_beta"][None, :] - mean_c * sc

        out = affine_act(y_b, sc, sh, "relu", row_tile=row_tile)    # (B, S, O)
        outs.append(out.reshape(B, D, H, W, O).transpose(0, 4, 1, 2, 3))
    return tuple(outs)


def init_dcn_params(key, c_in, c_out, k):
    k1, k2, k3, k4 = jax.random.split(key, 4)
    return dict(
        off_w=0.1 * jax.random.normal(k1, (3 * k, c_in, 3, 3, 3), jnp.float32),
        off_b=0.1 * jax.random.normal(k2, (3 * k,), jnp.float32),
        bn_gamma=jnp.ones((3 * k,), jnp.float32),
        bn_beta=jnp.zeros((3 * k,), jnp.float32),
        conv_w=0.1 * jax.random.normal(k3, (c_out, c_in, k), jnp.float32),
        conv_b=0.1 * jax.random.normal(k4, (c_out,), jnp.float32),
        gn_gamma=jnp.ones((c_out,), jnp.float32),
        gn_beta=jnp.zeros((c_out,), jnp.float32),
    )


if __name__ == "__main__":
    B, C_in, C_out = 2, 4, 8
    D = H = W = 8

    key = jax.random.PRNGKey(0)
    kx, kp = jax.random.split(key)
    x = jax.random.normal(kx, (B, C_in, D, H, W), jnp.float32)
    params = {name: init_dcn_params(kk, C_in, C_out, 3)
              for name, kk in zip(("x", "y", "z"), jax.random.split(kp, 3))}

    # row_tile=256 exercises the multi-tile (B, row-tile) grid path at this small size;
    # production volumes use the default 1024-row tiles.
    fwd = jax.jit(functools.partial(dsc_conv_forward, row_tile=256))
    outs = fwd(x, params)
    outs = jax.block_until_ready(outs)

    assert len(outs) == 3
    for o in outs:
        assert o.shape == (B, C_out, D, H, W), o.shape
        assert bool(jnp.all(jnp.isfinite(o)))
        assert bool(jnp.all(o >= 0.0))  # ReLU output
    print("KERNEL_OK")
</pallas_src>

<mosaic_0001>
module attributes {stable_mosaic.version = 11 : i64} {
  func.func @_matmul_bias_moments_kernel(%arg0: i32, %arg1: i32, %arg2: memref<1x256x108xbf16, #tpu.memory_space<vmem>>, %arg3: memref<108x27xbf16, #tpu.memory_space<vmem>>, %arg4: memref<1x27xf32, #tpu.memory_space<vmem>>, %arg5: memref<1x256x27xbf16, #tpu.memory_space<vmem>>, %arg6: memref<1x1x2x27xf32, #tpu.memory_space<vmem>>) attributes {dimension_semantics = [#tpu.dimension_semantics<parallel>, #tpu.dimension_semantics<parallel>], iteration_bounds = array<i64: 1, 4>, scalar_prefetch = 0 : i64, scratch_operands = 0 : i64, tpu.core_type = #tpu.core_type<tc>, window_params = [{transform_indices = @transform_0, window_bounds = array<i64: 1, 256, 108>}, {pipeline_mode = #tpu.pipeline_mode<synchronous>, transform_indices = @transform_1, window_bounds = array<i64: 108, 27>}, {pipeline_mode = #tpu.pipeline_mode<synchronous>, transform_indices = @transform_2, window_bounds = array<i64: 1, 27>}, {transform_indices = @transform_3, window_bounds = array<i64: 1, 256, 27>}, {transform_indices = @transform_4, window_bounds = array<i64: 1, 1, 2, 27>}]} {
    %c0 = arith.constant 0 : index
    %c0_0 = arith.constant 0 : index
    %c0_1 = arith.constant 0 : index
    %0 = vector.load %arg2[%c0, %c0_0, %c0_1] : memref<1x256x108xbf16, #tpu.memory_space<vmem>>, vector<1x256x108xbf16>
    %1 = vector.shape_cast %0 : vector<1x256x108xbf16> to vector<256x108xbf16>
    %c0_2 = arith.constant 0 : index
    %c0_3 = arith.constant 0 : index
    %2 = vector.load %arg3[%c0_2, %c0_3] : memref<108x27xbf16, #tpu.memory_space<vmem>>, vector<108x27xbf16>
    %cst = arith.constant dense<0.000000e+00> : vector<256x27xf32>
    %3 = tpu.matmul %1, %2, %cst {dimension_numbers = #tpu.dot_dimension_numbers<[1], [0], [0], [1], [0, 0, 1, 1], [], []>} : vector<256x108xbf16>, vector<108x27xbf16>, vector<256x27xf32> -> vector<256x27xf32>
    %c0_4 = arith.constant 0 : index
    %c0_5 = arith.constant 0 : index
    %4 = vector.load %arg4[%c0_4, %c0_5] : memref<1x27xf32, #tpu.memory_space<vmem>>, vector<1x27xf32>
    %5 = vector.broadcast %4 : vector<1x27xf32> to vector<256x27xf32>
    %6 = arith.addf %3, %5 : vector<256x27xf32>
    %cst_6 = arith.constant dense<0.000000e+00> : vector<27xf32>
    %7 = vector.multi_reduction <add>, %6, %cst_6 [0] : vector<256x27xf32> to vector<27xf32>
    %8 = vector.shape_cast %7 : vector<27xf32> to vector<1x27xf32>
    %cst_7 = arith.constant 2.560000e+02 : f32
    %9 = vector.broadcast %cst_7 : f32 to vector<1x27xf32>
    %10 = arith.divf %8, %9 : vector<1x27xf32>
    %11 = arith.mulf %6, %6 : vector<256x27xf32>
    %cst_8 = arith.constant dense<0.000000e+00> : vector<27xf32>
    %12 = vector.multi_reduction <add>, %11, %cst_8 [0] : vector<256x27xf32> to vector<27xf32>
    %13 = vector.shape_cast %12 : vector<27xf32> to vector<1x27xf32>
    %cst_9 = arith.constant 2.560000e+02 : f32
    %14 = vector.broadcast %cst_9 : f32 to vector<1x27xf32>
    %15 = arith.divf %13, %14 : vector<1x27xf32>
    %16 = tpu.concatenate %10, %15 in 0 : vector<1x27xf32>, vector<1x27xf32> -> vector<2x27xf32>
    %c0_10 = arith.constant 0 : index
    %c0_11 = arith.constant 0 : index
    %c0_12 = arith.constant 0 : index
    %c0_13 = arith.constant 0 : index
    %17 = vector.load %arg6[%c0_10, %c0_11, %c0_12, %c0_13] : memref<1x1x2x27xf32, #tpu.memory_space<vmem>>, vector<1x1x2x27xf32>
    %18 = vector.shape_cast %17 : vector<1x1x2x27xf32> to vector<2x27xf32>
    %19 = vector.shape_cast %16 : vector<2x27xf32> to vector<1x1x2x27xf32>
    tpu.vector_store %arg6[%c0_10, %c0_11, %c0_12, %c0_13], %19 {strides = array<i32>} : memref<1x1x2x27xf32, #tpu.memory_space<vmem>>, vector<1x1x2x27xf32>,
    %20 = arith.truncf %6 : vector<256x27xf32> to vector<256x27xbf16>
    %c0_14 = arith.constant 0 : index
    %c0_15 = arith.constant 0 : index
    %c0_16 = arith.constant 0 : index
    %21 = vector.load %arg5[%c0_14, %c0_15, %c0_16] : memref<1x256x27xbf16, #tpu.memory_space<vmem>>, vector<1x256x27xbf16>
    %22 = vector.shape_cast %21 : vector<1x256x27xbf16> to vector<256x27xbf16>
    %23 = vector.shape_cast %20 : vector<256x27xbf16> to vector<1x256x27xbf16>
    tpu.vector_store %arg5[%c0_14, %c0_15, %c0_16], %23 {strides = array<i32>} : memref<1x256x27xbf16, #tpu.memory_space<vmem>>, vector<1x256x27xbf16>,
    return
  }
  func.func @transform_0(%arg0: i32, %arg1: i32) -> (i32, i32, i32) {
    %c0_i32 = arith.constant 0 : i32
    %c0_i32_0 = arith.constant 0 : i32
    return %arg0, %arg1, %c0_i32 : i32, i32, i32
  }
  func.func @transform_1(%arg0: i32, %arg1: i32) -> (i32, i32) {
    %c0_i32 = arith.constant 0 : i32
    %c0_i32_0 = arith.constant 0 : i32
    %c0_i32_1 = arith.constant 0 : i32
    return %c0_i32, %c0_i32_0 : i32, i32
  }
  func.func @transform_2(%arg0: i32, %arg1: i32) -> (i32, i32) {
    %c0_i32 = arith.constant 0 : i32
    %c0_i32_0 = arith.constant 0 : i32
    %c0_i32_1 = arith.constant 0 : i32
    return %c0_i32, %c0_i32_0 : i32, i32
  }
  func.func @transform_3(%arg0: i32, %arg1: i32) -> (i32, i32, i32) {
    %c0_i32 = arith.constant 0 : i32
    %c0_i32_0 = arith.constant 0 : i32
    return %arg0, %arg1, %c0_i32 : i32, i32, i32
  }
  func.func @transform_4(%arg0: i32, %arg1: i32) -> (i32, i32, i32, i32) {
    %c0_i32 = arith.constant 0 : i32
    %c0_i32_0 = arith.constant 0 : i32
    %c0_i32_1 = arith.constant 0 : i32
    return %arg0, %arg1, %c0_i32, %c0_i32_0 : i32, i32, i32, i32
  }
}

module attributes {stable_mosaic.version = 11 : i64} {
  func.func @_affine_act_kernel(%arg0: i32, %arg1: i32, %arg2: memref<1x8x3456xbf16, #tpu.memory_space<vmem>>, %arg3: memref<1x1x3456xf32, #tpu.memory_space<vmem>>, %arg4: memref<1x1x3456xf32, #tpu.memory_space<vmem>>, %arg5: memref<1x8x3456xf32, #tpu.memory_space<vmem>>) attributes {dimension_semantics = [#tpu.dimension_semantics<parallel>, #tpu.dimension_semantics<parallel>], iteration_bounds = array<i64: 1, 1>, scalar_prefetch = 0 : i64, scratch_operands = 0 : i64, tpu.core_type = #tpu.core_type<tc>, window_params = [{transform_indices = @transform_0, window_bounds = array<i64: 1, 8, 3456>}, {transform_indices = @transform_1, window_bounds = array<i64: 1, 1, 3456>}, {transform_indices = @transform_2, window_bounds = array<i64: 1, 1, 3456>}, {transform_indices = @transform_3, window_bounds = array<i64: 1, 8, 3456>}]} {
    %c0 = arith.constant 0 : index
    %c0_0 = arith.constant 0 : index
    %c0_1 = arith.constant 0 : index
    %0 = vector.load %arg2[%c0, %c0_0, %c0_1] : memref<1x8x3456xbf16, #tpu.memory_space<vmem>>, vector<1x8x3456xbf16>
    %1 = vector.shape_cast %0 : vector<1x8x3456xbf16> to vector<8x3456xbf16>
    %2 = arith.extf %1 : vector<8x3456xbf16> to vector<8x3456xf32>
    %c0_2 = arith.constant 0 : index
    %c0_3 = arith.constant 0 : index
    %c0_4 = arith.constant 0 : index
    %3 = vector.load %arg3[%c0_2, %c0_3, %c0_4] : memref<1x1x3456xf32, #tpu.memory_space<vmem>>, vector<1x1x3456xf32>
    %4 = vector.shape_cast %3 : vector<1x1x3456xf32> to vector<1x3456xf32>
    %5 = vector.broadcast %4 : vector<1x3456xf32> to vector<8x3456xf32>
    %6 = arith.mulf %2, %5 : vector<8x3456xf32>
    %c0_5 = arith.constant 0 : index
    %c0_6 = arith.constant 0 : index
    %c0_7 = arith.constant 0 : index
    %7 = vector.load %arg4[%c0_5, %c0_6, %c0_7] : memref<1x1x3456xf32, #tpu.memory_space<vmem>>, vector<1x1x3456xf32>
    %8 = vector.shape_cast %7 : vector<1x1x3456xf32> to vector<1x3456xf32>
    %9 = vector.broadcast %8 : vector<1x3456xf32> to vector<8x3456xf32>
    %10 = arith.addf %6, %9 : vector<8x3456xf32>
    %11 = math.tanh %10 : vector<8x3456xf32>
    %c0_8 = arith.constant 0 : index
    %c0_9 = arith.constant 0 : index
    %c0_10 = arith.constant 0 : index
    %12 = vector.load %arg5[%c0_8, %c0_9, %c0_10] : memref<1x8x3456xf32, #tpu.memory_space<vmem>>, vector<1x8x3456xf32>
    %13 = vector.shape_cast %12 : vector<1x8x3456xf32> to vector<8x3456xf32>
    %14 = vector.shape_cast %11 : vector<8x3456xf32> to vector<1x8x3456xf32>
    tpu.vector_store %arg5[%c0_8, %c0_9, %c0_10], %14 {strides = array<i32>} : memref<1x8x3456xf32, #tpu.memory_space<vmem>>, vector<1x8x3456xf32>,
    return
  }
  func.func @transform_0(%arg0: i32, %arg1: i32) -> (i32, i32, i32) {
    %c0_i32 = arith.constant 0 : i32
    %c0_i32_0 = arith.constant 0 : i32
    return %arg0, %arg1, %c0_i32 : i32, i32, i32
  }
  func.func @transform_1(%arg0: i32, %arg1: i32) -> (i32, i32, i32) {
    %c0_i32 = arith.constant 0 : i32
    %c0_i32_0 = arith.constant 0 : i32
    %c0_i32_1 = arith.constant 0 : i32
    return %arg0, %c0_i32, %c0_i32_0 : i32, i32, i32
  }
  func.func @transform_2(%arg0: i32, %arg1: i32) -> (i32, i32, i32) {
    %c0_i32 = arith.constant 0 : i32
    %c0_i32_0 = arith.constant 0 : i32
    %c0_i32_1 = arith.constant 0 : i32
    return %arg0, %c0_i32, %c0_i32_0 : i32, i32, i32
  }
  func.func @transform_3(%arg0: i32, %arg1: i32) -> (i32, i32, i32) {
    %c0_i32 = arith.constant 0 : i32
    %c0_i32_0 = arith.constant 0 : i32
    return %arg0, %arg1, %c0_i32 : i32, i32, i32
  }
}

module attributes {stable_mosaic.version = 11 : i64} {
  func.func @_matmul_bias_moments_kernel(%arg0: i32, %arg1: i32, %arg2: memref<1x256x12xbf16, #tpu.memory_space<vmem>>, %arg3: memref<12x8xbf16, #tpu.memory_space<vmem>>, %arg4: memref<1x8xf32, #tpu.memory_space<vmem>>, %arg5: memref<1x256x8xbf16, #tpu.memory_space<vmem>>, %arg6: memref<1x1x2x8xf32, #tpu.memory_space<vmem>>) attributes {dimension_semantics = [#tpu.dimension_semantics<parallel>, #tpu.dimension_semantics<parallel>], iteration_bounds = array<i64: 2, 2>, scalar_prefetch = 0 : i64, scratch_operands = 0 : i64, tpu.core_type = #tpu.core_type<tc>, window_params = [{transform_indices = @transform_0, window_bounds = array<i64: 1, 256, 12>}, {pipeline_mode = #tpu.pipeline_mode<synchronous>, transform_indices = @transform_1, window_bounds = array<i64: 12, 8>}, {pipeline_mode = #tpu.pipeline_mode<synchronous>, transform_indices = @transform_2, window_bounds = array<i64: 1, 8>}, {transform_indices = @transform_3, window_bounds = array<i64: 1, 256, 8>}, {transform_indices = @transform_4, window_bounds = array<i64: 1, 1, 2, 8>}]} {
    %c0 = arith.constant 0 : index
    %c0_0 = arith.constant 0 : index
    %c0_1 = arith.constant 0 : index
    %0 = vector.load %arg2[%c0, %c0_0, %c0_1] : memref<1x256x12xbf16, #tpu.memory_space<vmem>>, vector<1x256x12xbf16>
    %1 = vector.shape_cast %0 : vector<1x256x12xbf16> to vector<256x12xbf16>
    %c0_2 = arith.constant 0 : index
    %c0_3 = arith.constant 0 : index
    %2 = vector.load %arg3[%c0_2, %c0_3] : memref<12x8xbf16, #tpu.memory_space<vmem>>, vector<12x8xbf16>
    %cst = arith.constant dense<0.000000e+00> : vector<256x8xf32>
    %3 = tpu.matmul %1, %2, %cst {dimension_numbers = #tpu.dot_dimension_numbers<[1], [0], [0], [1], [0, 0, 1, 1], [], []>} : vector<256x12xbf16>, vector<12x8xbf16>, vector<256x8xf32> -> vector<256x8xf32>
    %c0_4 = arith.constant 0 : index
    %c0_5 = arith.constant 0 : index
    %4 = vector.load %arg4[%c0_4, %c0_5] : memref<1x8xf32, #tpu.memory_space<vmem>>, vector<1x8xf32>
    %5 = vector.broadcast %4 : vector<1x8xf32> to vector<256x8xf32>
    %6 = arith.addf %3, %5 : vector<256x8xf32>
    %cst_6 = arith.constant dense<0.000000e+00> : vector<8xf32>
    %7 = vector.multi_reduction <add>, %6, %cst_6 [0] : vector<256x8xf32> to vector<8xf32>
    %8 = vector.shape_cast %7 : vector<8xf32> to vector<1x8xf32>
    %cst_7 = arith.constant 2.560000e+02 : f32
    %9 = vector.broadcast %cst_7 : f32 to vector<1x8xf32>
    %10 = arith.divf %8, %9 : vector<1x8xf32>
    %11 = arith.mulf %6, %6 : vector<256x8xf32>
    %cst_8 = arith.constant dense<0.000000e+00> : vector<8xf32>
    %12 = vector.multi_reduction <add>, %11, %cst_8 [0] : vector<256x8xf32> to vector<8xf32>
    %13 = vector.shape_cast %12 : vector<8xf32> to vector<1x8xf32>
    %cst_9 = arith.constant 2.560000e+02 : f32
    %14 = vector.broadcast %cst_9 : f32 to vector<1x8xf32>
    %15 = arith.divf %13, %14 : vector<1x8xf32>
    %16 = tpu.concatenate %10, %15 in 0 : vector<1x8xf32>, vector<1x8xf32> -> vector<2x8xf32>
    %c0_10 = arith.constant 0 : index
    %c0_11 = arith.constant 0 : index
    %c0_12 = arith.constant 0 : index
    %c0_13 = arith.constant 0 : index
    %17 = vector.load %arg6[%c0_10, %c0_11, %c0_12, %c0_13] : memref<1x1x2x8xf32, #tpu.memory_space<vmem>>, vector<1x1x2x8xf32>
    %18 = vector.shape_cast %17 : vector<1x1x2x8xf32> to vector<2x8xf32>
    %19 = vector.shape_cast %16 : vector<2x8xf32> to vector<1x1x2x8xf32>
    tpu.vector_store %arg6[%c0_10, %c0_11, %c0_12, %c0_13], %19 {strides = array<i32>} : memref<1x1x2x8xf32, #tpu.memory_space<vmem>>, vector<1x1x2x8xf32>,
    %20 = arith.truncf %6 : vector<256x8xf32> to vector<256x8xbf16>
    %c0_14 = arith.constant 0 : index
    %c0_15 = arith.constant 0 : index
    %c0_16 = arith.constant 0 : index
    %21 = vector.load %arg5[%c0_14, %c0_15, %c0_16] : memref<1x256x8xbf16, #tpu.memory_space<vmem>>, vector<1x256x8xbf16>
    %22 = vector.shape_cast %21 : vector<1x256x8xbf16> to vector<256x8xbf16>
    %23 = vector.shape_cast %20 : vector<256x8xbf16> to vector<1x256x8xbf16>
    tpu.vector_store %arg5[%c0_14, %c0_15, %c0_16], %23 {strides = array<i32>} : memref<1x256x8xbf16, #tpu.memory_space<vmem>>, vector<1x256x8xbf16>,
    return
  }
  func.func @transform_0(%arg0: i32, %arg1: i32) -> (i32, i32, i32) {
    %c0_i32 = arith.constant 0 : i32
    %c0_i32_0 = arith.constant 0 : i32
    return %arg0, %arg1, %c0_i32 : i32, i32, i32
  }
  func.func @transform_1(%arg0: i32, %arg1: i32) -> (i32, i32) {
    %c0_i32 = arith.constant 0 : i32
    %c0_i32_0 = arith.constant 0 : i32
    %c0_i32_1 = arith.constant 0 : i32
    return %c0_i32, %c0_i32_0 : i32, i32
  }
  func.func @transform_2(%arg0: i32, %arg1: i32) -> (i32, i32) {
    %c0_i32 = arith.constant 0 : i32
    %c0_i32_0 = arith.constant 0 : i32
    %c0_i32_1 = arith.constant 0 : i32
    return %c0_i32, %c0_i32_0 : i32, i32
  }
  func.func @transform_3(%arg0: i32, %arg1: i32) -> (i32, i32, i32) {
    %c0_i32 = arith.constant 0 : i32
    %c0_i32_0 = arith.constant 0 : i32
    return %arg0, %arg1, %c0_i32 : i32, i32, i32
  }
  func.func @transform_4(%arg0: i32, %arg1: i32) -> (i32, i32, i32, i32) {
    %c0_i32 = arith.constant 0 : i32
    %c0_i32_0 = arith.constant 0 : i32
    %c0_i32_1 = arith.constant 0 : i32
    return %arg0, %arg1, %c0_i32, %c0_i32_0 : i32, i32, i32, i32
  }
}

module attributes {stable_mosaic.version = 11 : i64} {
  func.func @_affine_act_kernel(%arg0: i32, %arg1: i32, %arg2: memref<1x16x128xbf16, #tpu.memory_space<vmem>>, %arg3: memref<1x1x128xf32, #tpu.memory_space<vmem>>, %arg4: memref<1x1x128xf32, #tpu.memory_space<vmem>>, %arg5: memref<1x16x128xf32, #tpu.memory_space<vmem>>) attributes {dimension_semantics = [#tpu.dimension_semantics<parallel>, #tpu.dimension_semantics<parallel>], iteration_bounds = array<i64: 2, 2>, scalar_prefetch = 0 : i64, scratch_operands = 0 : i64, tpu.core_type = #tpu.core_type<tc>, window_params = [{transform_indices = @transform_0, window_bounds = array<i64: 1, 16, 128>}, {transform_indices = @transform_1, window_bounds = array<i64: 1, 1, 128>}, {transform_indices = @transform_2, window_bounds = array<i64: 1, 1, 128>}, {transform_indices = @transform_3, window_bounds = array<i64: 1, 16, 128>}]} {
    %c0 = arith.constant 0 : index
    %c0_0 = arith.constant 0 : index
    %c0_1 = arith.constant 0 : index
    %0 = vector.load %arg2[%c0, %c0_0, %c0_1] : memref<1x16x128xbf16, #tpu.memory_space<vmem>>, vector<1x16x128xbf16>
    %1 = vector.shape_cast %0 : vector<1x16x128xbf16> to vector<16x128xbf16>
    %2 = arith.extf %1 : vector<16x128xbf16> to vector<16x128xf32>
    %c0_2 = arith.constant 0 : index
    %c0_3 = arith.constant 0 : index
    %c0_4 = arith.constant 0 : index
    %3 = vector.load %arg3[%c0_2, %c0_3, %c0_4] : memref<1x1x128xf32, #tpu.memory_space<vmem>>, vector<1x1x128xf32>
    %4 = vector.shape_cast %3 : vector<1x1x128xf32> to vector<1x128xf32>
    %5 = vector.broadcast %4 : vector<1x128xf32> to vector<16x128xf32>
    %6 = arith.mulf %2, %5 : vector<16x128xf32>
    %c0_5 = arith.constant 0 : index
    %c0_6 = arith.constant 0 : index
    %c0_7 = arith.constant 0 : index
    %7 = vector.load %arg4[%c0_5, %c0_6, %c0_7] : memref<1x1x128xf32, #tpu.memory_space<vmem>>, vector<1x1x128xf32>
    %8 = vector.shape_cast %7 : vector<1x1x128xf32> to vector<1x128xf32>
    %9 = vector.broadcast %8 : vector<1x128xf32> to vector<16x128xf32>
    %10 = arith.addf %6, %9 : vector<16x128xf32>
    %cst = arith.constant 0.000000e+00 : f32
    %11 = vector.broadcast %cst : f32 to vector<16x128xf32>
    %12 = arith.maximumf %10, %11 : vector<16x128xf32>
    %c0_8 = arith.constant 0 : index
    %c0_9 = arith.constant 0 : index
    %c0_10 = arith.constant 0 : index
    %13 = vector.load %arg5[%c0_8, %c0_9, %c0_10] : memref<1x16x128xf32, #tpu.memory_space<vmem>>, vector<1x16x128xf32>
    %14 = vector.shape_cast %13 : vector<1x16x128xf32> to vector<16x128xf32>
    %15 = vector.shape_cast %12 : vector<16x128xf32> to vector<1x16x128xf32>
    tpu.vector_store %arg5[%c0_8, %c0_9, %c0_10], %15 {strides = array<i32>} : memref<1x16x128xf32, #tpu.memory_space<vmem>>, vector<1x16x128xf32>,
    return
  }
  func.func @transform_0(%arg0: i32, %arg1: i32) -> (i32, i32, i32) {
    %c0_i32 = arith.constant 0 : i32
    %c0_i32_0 = arith.constant 0 : i32
    return %arg0, %arg1, %c0_i32 : i32, i32, i32
  }
  func.func @transform_1(%arg0: i32, %arg1: i32) -> (i32, i32, i32) {
    %c0_i32 = arith.constant 0 : i32
    %c0_i32_0 = arith.constant 0 : i32
    %c0_i32_1 = arith.constant 0 : i32
    return %arg0, %c0_i32, %c0_i32_0 : i32, i32, i32
  }
  func.func @transform_2(%arg0: i32, %arg1: i32) -> (i32, i32, i32) {
    %c0_i32 = arith.constant 0 : i32
    %c0_i32_0 = arith.constant 0 : i32
    %c0_i32_1 = arith.constant 0 : i32
    return %arg0, %c0_i32, %c0_i32_0 : i32, i32, i32
  }
  func.func @transform_3(%arg0: i32, %arg1: i32) -> (i32, i32, i32) {
    %c0_i32 = arith.constant 0 : i32
    %c0_i32_0 = arith.constant 0 : i32
    return %arg0, %arg1, %c0_i32 : i32, i32, i32
  }
}

</mosaic_0001>

<bundles_post_ra>
// kernel: dsc_conv_forward.8
= control target key start
LH: loop header
LB: loop body
LE: loop exit
PB: predicated region body
PF: predicated region fallthrough
CT: control target
= control target key end

     0   :  { %s1417_s15 = smov 0   ;;  %s1419_s16 = smov 0   ;;  %s1782_s0 = inlined_call_operand.vmem [shape: bf16[1,1024,108], index: 0, kind: input, shape index: {}]   ;;  %s1783_s1 = inlined_call_operand.vmem [shape: bf16[108,27], index: 1, kind: input, shape index: {}]   ;;  %s1784_s2 = inlined_call_operand.vmem [shape: f32[1,27], index: 2, kind: input, shape index: {}]   ;;  %s1785_s3 = inlined_call_operand.vmem [shape: bf16[1,1024,27], index: 3, kind: output, shape index: {0}]   ;;  %s1786_s4 = inlined_call_operand.vmem [shape: f32[1,4,2,27], index: 4, kind: output, shape index: {1}]  }
   0x1   :  { %s1421_s17 = smov 0  }
   0x2 LB: > { %s24_s18 = sadd.s32 1, %s1386_s16  ;;  %p1124_p0 = scmp.ge.s32.totalorder %s1390_s17, 1  ;;  %s1390_s17 = sphi %s1421_s17, %s15_s17   ;;  %s1386_s16 = sphi %s1419_s16, %s1788_s16   ;;  %s1382_s15 = sphi %s1417_s15, %s1787_s15  }
   0x3   : > { %p25_p1 = scmp.ge.s32.totalorder %s24_s18, 4  ;;  %p188_p2 = scmp.lt.s32.totalorder %s1390_s17, 5 }
   0x5   : > { %s1790_s18 = smov (%p25_p1, %s24_s18), 0  ;;  %p189_p3 = pnand %p1124_p0, %p188_p2 }
   0x6   : > { %v1345_v0 = vld [vmem:[%s1783_s1] sm:$0xff] (!%p189_p3)   ;;  %v1346_v1 = vld [vmem:[%s1783_s1 + $0x8] sm:$0xff] (!%p189_p3)   ;;  %s1125_s23 = sshll.u32 (!%p189_p3), %s1382_s15, 5  ;;  %v1347_v2 = vld [vmem:[%s1783_s1 + $0x10] sm:$0xff] (!%p189_p3)   ;;  %vm433_vm0 = vcmask (!%p189_p3), 883712   ;;  %vm482_vm1 = vcmask (!%p189_p3), 1045504  }
   0x7   : > { %192 = sbr.rel (%p189_p3) target bundleno = 333 (0x14d), region = 32  ;;  %1259 = vmatprep.subr.bf16.mxu0 (!%p189_p3), %v1345_v0  ;;  %p233_p4 = scmp.lt.s32.totalorder (!%p189_p3), %s1125_s23, 127  ;;  %1305 = vmatprep.subr.bf16.mxu1 (!%p189_p3), %v1345_v0  ;;  %v1348_v3 = vld [vmem:[%s1783_s1 + $0x18] sm:$0xff] (!%p189_p3)   ;;  %v1349_v5 = vld [vmem:[%s1783_s1 + $0x20] sm:$0xff] (!%p189_p3)   ;;  %v1350_v6 = vld [vmem:[%s1783_s1 + $0x28] sm:$0xff] (!%p189_p3)   ;;  %vm953_vm2 = vcmask (!%p189_p3), 216064  }
   0x8   : > { %1260 = vmatpush3.bf16.msra.mxu0 (!%p189_p3), %v1345_v0  ;;  %1312 = vmatpush3.bf16.msra.mxu1 (!%p189_p3), %v1345_v0  ;;  %v1351_v8 = vld [vmem:[%s1783_s1 + $0x30] sm:$0x3f] (!%p189_p3)   ;;  %v1504_v24 = vld [vmem:[%s1784_s2] ss:$0 sm:$0xff] (!%p189_p3)  ;;  %vm647_vm3 = vcmask (!%p189_p3), 220160   ;;  %p252_p5 = scmp.lt.s32.totalorder (!%p189_p3), %s1382_s15, 3 }
   0x9   : > { %1261 = vmatprep.subr.bf16.mxu0 (!%p189_p3), %v1346_v1  ;;  %1306 = vmatprep.subr.bf16.mxu1 (!%p189_p3), %v1346_v1  ;;  %v484_v9 = vsel (!%p189_p3), %vm482_vm1, %v1351_v8, 0  ;;  %vm821_vm4 = vcmask (!%p189_p3), 1040384   ;;  %vm823_vm5 = vcmask (!%p189_p3), 214016  }
   0xc   : > { %1262 = vmatpush3.bf16.msra.mxu0 (!%p189_p3), %v1346_v1  ;;  %1313 = vmatpush3.bf16.msra.mxu1 (!%p189_p3), %v1346_v1 }
   0xd   : > { %1263 = vmatprep.subr.bf16.mxu0 (!%p189_p3), %v1347_v2  ;;  %1307 = vmatprep.subr.bf16.mxu1 (!%p189_p3), %v1347_v2 }
   0xe   : > { %s1792_s23 = smov (!%p233_p4, %s1125_s23), 127  ;;  %s1794_s15 = smov (!%p252_p5, %s1382_s15), 3 }
   0xf   : > { %s1126_s26 = sshll.u32 %s1792_s23, 2  ;;  %s1129_s21 = sshll.u32 %s1794_s15, 1 }
  0x10   : > { %s1458_s5 = scalar_lea.vmem %s1782_s0, %s1126_s26  ;;  %1264 = vmatpush3.bf16.msra.mxu0 %v1347_v2  ;;  %1314 = vmatpush3.bf16.msra.mxu1 %v1347_v2  ;;  %s1512_s20 = scalar_lea.vmem %s1785_s3, %s1126_s26 }
  0x11   : > { %v1352_v4 = vld [vmem:[%s1458_s5] sm:$0xff]   ;;  %1265 = vmatprep.subr.bf16.mxu0 %v1348_v3  ;;  %1308 = vmatprep.subr.bf16.mxu1 %v1348_v3  ;;  %v1353_v10 = vld [vmem:[%s1458_s5 + $0x8] sm:$0xff]   ;;  %v1354_v11 = vld [vmem:[%s1458_s5 + $0x10] sm:$0xff]   ;;  %s257_s24 = scalar_lea.vmem %s1786_s4, %s1129_s21 }
  0x12   : > { %1273 = vmatprep.mubr.msk.bf16.mxu0 %vm433_vm0, %v1352_v4  ;;  %v1360_v7 = vld [vmem:[%s1458_s5 + $0x40] sm:$0xff]   ;;  %v1361_v12 = vld [vmem:[%s1458_s5 + $0x48] sm:$0xff]   ;;  %v1362_v13 = vld [vmem:[%s1458_s5 + $0x50] sm:$0xff]  }
  0x13   : > { %1289 = vmatprep.mubr.msk.bf16.mxu1 %vm433_vm0, %v1360_v7  ;;  %v1355_v14 = vld [vmem:[%s1458_s5 + $0x18] sm:$0xff]   ;;  %v1356_v15 = vld [vmem:[%s1458_s5 + $0x20] sm:$0xff]   ;;  %v1357_v18 = vld [vmem:[%s1458_s5 + $0x28] sm:$0xff]  }
  0x14   : > { %1266 = vmatpush3.bf16.msra.mxu0 %v1348_v3  ;;  %1315 = vmatpush3.bf16.msra.mxu1 %v1348_v3  ;;  %v1363_v16 = vld [vmem:[%s1458_s5 + $0x58] sm:$0xff]   ;;  %v1364_v17 = vld [vmem:[%s1458_s5 + $0x60] sm:$0xff]   ;;  %v1358_v19 = vld [vmem:[%s1458_s5 + $0x30] sm:$0xff]  }
  0x15   : > { %1267 = vmatprep.subr.bf16.mxu0 %v1349_v5  ;;  %1309 = vmatprep.subr.bf16.mxu1 %v1349_v5  ;;  %v1365_v20 = vld [vmem:[%s1458_s5 + $0x68] sm:$0xff]   ;;  %v1366_v21 = vld [vmem:[%s1458_s5 + $0x70] sm:$0xff]   ;;  %v1359_v22 = vld [vmem:[%s1458_s5 + $0x38] sm:$0xff]  }
  0x16   : > { %v1367_v23 = vld [vmem:[%s1458_s5 + $0x78] sm:$0xff]  }
  0x18   : > { %1268 = vmatpush3.bf16.msra.mxu0 %v1349_v5  ;;  %1316 = vmatpush3.bf16.msra.mxu1 %v1349_v5 }
  0x19   : > { %1269 = vmatprep.subr.bf16.mxu0 %v1350_v6  ;;  %1310 = vmatprep.subr.bf16.mxu1 %v1350_v6 }
  0x1c   : > { %1270 = vmatpush3.bf16.msra.mxu0 %v1350_v6  ;;  %1317 = vmatpush3.bf16.msra.mxu1 %v1350_v6 }
  0x1d   : > { %1319 = vmatprep.subr.msk.bf16.mxu0 %vm482_vm1, %v1351_v8  ;;  %1320 = vmatprep.subr.msk.bf16.mxu1 %vm482_vm1, %v1351_v8 }
  0x20   : > { %1272 = vmatpush3.bf16.msra.mxu0 %v484_v9  ;;  %1318 = vmatpush3.bf16.msra.mxu1 %v484_v9 }
  0x23   : > { %1274 = vmatmul.mubr.msk.bf16.vlgmr.msra.gmra.mrb[0].mxu0 %vm433_vm0, %v1353_v10  ;;  %1290 = vmatmul.mubr.msk.bf16.vlgmr.msra.gmra.mrb[0].mxu1 %vm433_vm0, %v1361_v12 }
  0x24   : > { %1277 = vmatprep.mubr.msk.bf16.mxu0 %vm433_vm0, %v1354_v11  ;;  %1293 = vmatprep.mubr.msk.bf16.mxu1 %vm433_vm0, %v1362_v13 }
  0x2b   : > { %1278 = vmatmul.mubr.msk.bf16.gmra.mrb[4].mxu0 %vm433_vm0, %v1355_v14  ;;  %1294 = vmatmul.mubr.msk.bf16.gmra.mrb[4].mxu1 %vm433_vm0, %v1363_v16 }
  0x2c   : > { %1281 = vmatprep.mubr.msk.bf16.mxu0 %vm433_vm0, %v1356_v15  ;;  %1297 = vmatprep.mubr.msk.bf16.mxu1 %vm433_vm0, %v1364_v17 }
  0x33   : > { %1282 = vmatmul.mubr.msk.bf16.gmra.mrb[8].mxu0 %vm433_vm0, %v1357_v18  ;;  %1298 = vmatmul.mubr.msk.bf16.gmra.mrb[8].mxu1 %vm433_vm0, %v1365_v20 }
  0x34   : > { %1285 = vmatprep.mubr.msk.bf16.mxu0 %vm433_vm0, %v1358_v19  ;;  %1301 = vmatprep.mubr.msk.bf16.mxu1 %vm433_vm0, %v1366_v21 }
  0x3b   : > { %1286 = vmatmul.mubr.msk.bf16.gmra.mrb[12].mxu0 %vm433_vm0, %v1359_v22  ;;  %1302 = vmatmul.mubr.msk.bf16.gmra.mrb[12].mxu1 %vm433_vm0, %v1367_v23 }
  0xf6   : > { %v1275_v25 = vpop.f32.mrb[0].mxu0  ;;  %v1291_v28 = vpop.f32.mrb[0].mxu1 }
  0xf7   : > { %v529_v26 = vadd.f32 %v1275_v25, %v1504_v24  ;;  %v520_v27 = vpop.f32.mrb[1].mxu0  ;;  %v584_v31 = vpop.f32.mrb[1].mxu1  ;;  %v1518_v39 = vadd.f32 %v1291_v28, %v1504_v24 }
  0xf8   : > { %v521_v29 = vadd.f32 %v1504_v24, %v520_v27  ;;  %v1276_v30 = vpop.f32.mrb[2].mxu0  ;;  %v1292_v35 = vpop.f32.mrb[2].mxu1  ;;  %v1538_v54 = vadd.f32 %v1504_v24, %v584_v31 }
  0xf9   : > { %v1206_v32 = vpack.c.bf16 %v529_v26, %v529_v26  ;;  %v532_v33 = vadd.f32 %v1276_v30, %v1504_v24  ;;  %v523_v34 = vpop.f32.mrb[3].mxu0  ;;  %v1520_v40 = vpop.f32.mrb[3].mxu1  ;;  %v721_v41 = vmul.f32 %v529_v26, %v529_v26  ;;  %v651_v47 = vsel %vm647_vm3, %v529_v26, 0.0 }
  0xfa   : > { %v719_v36 = vmul.f32 %v521_v29, %v521_v29  ;;  %v1204_v37 = vpack.c.bf16 %v521_v29, %v521_v29  ;;  %v524_v38 = vadd.f32 %v1504_v24, %v523_v34  ;;  %v648_v43 = vsel %vm647_vm3, %v521_v29, 0.0 }
  0xfb   : > { %956 = vst.msk [vmem:[%s1512_s20 + $0x8] sm:$0xf] %vm953_vm2, %v1206_v32  ;;  %v1207_v42 = vpack.c.bf16 %v532_v33, %v532_v33  ;;  %v722_v48 = vmul.f32 %v532_v33, %v532_v33  ;;  %v1222_v53 = vpack.c.bf16 %v1518_v39, %v1518_v39  ;;  %v754_v60 = vsel %vm647_vm3, %v721_v41, 0.0 }
  0xfc   : > { %954 = vst.msk [vmem:[%s1512_s20] sm:$0xf] %vm953_vm2, %v1204_v37  ;;  %v649_v44 = vsel %vm647_vm3, %v524_v38, 0.0  ;;  %v720_v45 = vmul.f32 %v524_v38, %v524_v38  ;;  %v1205_v46 = vpack.c.bf16 %v524_v38, %v524_v38  ;;  %v751_v50 = vsel %vm647_vm3, %v719_v36, 0.0 }
  0xfd   : > { %957 = vst.msk [vmem:[%s1512_s20 + $0xc] sm:$0xf] %vm953_vm2, %v1207_v42  ;;  %v650_v49 = vadd.f32 %v649_v44, %v648_v43  ;;  %972 = vst.msk [vmem:[%s1512_s20 + $0x48] sm:$0xf] %vm953_vm2, %v1222_v53  ;;  %v1220_v63 = vpack.c.bf16 %v1538_v54, %v1538_v54  ;;  %v653_v1 = vsel %vm647_vm3, %v532_v33, 0.0  ;;  %v756_v2 = vsel %vm647_vm3, %v722_v48, 0.0 }
  0xfe   : > { %v752_v51 = vsel %vm647_vm3, %v720_v45, 0.0  ;;  %955 = vst.msk [vmem:[%s1512_s20 + $0x4] sm:$0xf] %vm953_vm2, %v1205_v46  ;;  %v1279_v52 = vpop.f32.mrb[4].mxu0  ;;  %v1541_v59 = vpop.f32.mrb[4].mxu1  ;;  %v1565_v15 = vadd.f32 %v1292_v35, %v1504_v24 }
  0xff   : > { %v652_v55 = vadd.f32 %v651_v47, %v650_v49  ;;  %v753_v56 = vadd.f32 %v752_v51, %v751_v50  ;;  %v545_v57 = vadd.f32 %v1279_v52, %v1504_v24  ;;  %v536_v58 = vpop.f32.mrb[5].mxu0  ;;  %v1549_v0 = vpop.f32.mrb[5].mxu1  ;;  %970 = vst.msk [vmem:[%s1512_s20 + $0x40] sm:$0xf] %vm953_vm2, %v1220_v63 }
 0x100   : > { %v537_v61 = vadd.f32 %v1504_v24, %v536_v58  ;;  %v1280_v62 = vpop.f32.mrb[6].mxu0  ;;  %v1553_v6 = vpop.f32.mrb[6].mxu1  ;;  %v1223_v29 = vpack.c.bf16 %v1565_v15, %v1565_v15 }
 0x101   : > { %v755_v3 = vadd.f32 %v754_v60, %v753_v56  ;;  %v1210_v4 = vpack.c.bf16 %v545_v57, %v545_v57  ;;  %v539_v5 = vpop.f32.mrb[7].mxu0  ;;  %v654_v7 = vadd.f32 %v653_v1, %v652_v55  ;;  %v1558_v11 = vpop.f32.mrb[7].mxu1  ;;  %v548_v13 = vadd.f32 %v1280_v62, %v1504_v24 }
 0x102   : > { %v655_v8 = vsel %vm647_vm3, %v537_v61, 0.0  ;;  %v723_v9 = vmul.f32 %v537_v61, %v537_v61  ;;  %v1208_v10 = vpack.c.bf16 %v537_v61, %v537_v61  ;;  %v540_v14 = vadd.f32 %v1504_v24, %v539_v5  ;;  %973 = vst.msk [vmem:[%s1512_s20 + $0x4c] sm:$0xf] %vm953_vm2, %v1223_v29 }
 0x103   : > { %960 = vst.msk [vmem:[%s1512_s20 + $0x18] sm:$0xf] %vm953_vm2, %v1210_v4  ;;  %v757_v12 = vadd.f32 %v756_v2, %v755_v3  ;;  %v656_v16 = vadd.f32 %v655_v8, %v654_v7  ;;  %v725_v18 = vmul.f32 %v545_v57, %v545_v57  ;;  %v1211_v20 = vpack.c.bf16 %v548_v13, %v548_v13 }
 0x104   : > { %v758_v17 = vsel %vm647_vm3, %v723_v9, 0.0  ;;  %958 = vst.msk [vmem:[%s1512_s20 + $0x10] sm:$0xf] %vm953_vm2, %v1208_v10  ;;  %v657_v21 = vsel %vm647_vm3, %v540_v14, 0.0  ;;  %v724_v22 = vmul.f32 %v540_v14, %v540_v14  ;;  %v1209_v23 = vpack.c.bf16 %v540_v14, %v540_v14 }
 0x105   : > { %v759_v19 = vadd.f32 %v758_v17, %v757_v12  ;;  %961 = vst.msk [vmem:[%s1512_s20 + $0x1c] sm:$0xf] %vm953_vm2, %v1211_v20  ;;  %v658_v26 = vadd.f32 %v657_v21, %v656_v16  ;;  %v659_v31 = vsel %vm647_vm3, %v545_v57, 0.0  ;;  %v726_v32 = vmul.f32 %v548_v13, %v548_v13 }
 0x106   : > { %v1283_v25 = vpop.f32.mrb[8].mxu0  ;;  %v1576_v30 = vpop.f32.mrb[8].mxu1  ;;  %v760_v33 = vsel %vm647_vm3, %v724_v22, 0.0  ;;  %959 = vst.msk [vmem:[%s1512_s20 + $0x14] sm:$0xf] %vm953_vm2, %v1209_v23  ;;  %v762_v37 = vsel %vm647_vm3, %v725_v18, 0.0  ;;  %v1604_v57 = vadd.f32 %v1504_v24, %v1520_v40 }
 0x107   : > { %v561_v27 = vadd.f32 %v1283_v25, %v1504_v24  ;;  %v552_v28 = vpop.f32.mrb[9].mxu0  ;;  %v1583_v36 = vpop.f32.mrb[9].mxu1  ;;  %v661_v38 = vsel %vm647_vm3, %v548_v13, 0.0  ;;  %v660_v41 = vadd.f32 %v659_v31, %v658_v26  ;;  %v761_v42 = vadd.f32 %v760_v33, %v759_v19 }
 0x108   : > { %v553_v34 = vadd.f32 %v1504_v24, %v552_v28  ;;  %v1284_v35 = vpop.f32.mrb[10].mxu0  ;;  %v1589_v44 = vpop.f32.mrb[10].mxu1  ;;  %v764_v53 = vsel %vm647_vm3, %v726_v32, 0.0  ;;  %v1221_v16 = vpack.c.bf16 %v1604_v57, %v1604_v57 }
 0x109   : > { %v555_v43 = vpop.f32.mrb[11].mxu0  ;;  %v1214_v45 = vpack.c.bf16 %v561_v27, %v561_v27  ;;  %v1592_v49 = vpop.f32.mrb[11].mxu1  ;;  %v763_v50 = vadd.f32 %v762_v37, %v761_v42  ;;  %v662_v51 = vadd.f32 %v661_v38, %v660_v41  ;;  %v564_v52 = vadd.f32 %v1284_v35, %v1504_v24 }
 0x10a   : > { %v663_v46 = vsel %vm647_vm3, %v553_v34, 0.0  ;;  %v727_v47 = vmul.f32 %v553_v34, %v553_v34  ;;  %v1212_v48 = vpack.c.bf16 %v553_v34, %v553_v34  ;;  %v556_v56 = vadd.f32 %v1504_v24, %v555_v43  ;;  %971 = vst.msk [vmem:[%s1512_s20 + $0x44] sm:$0xf] %vm953_vm2, %v1221_v16 }
 0x10b   : > { %964 = vst.msk [vmem:[%s1512_s20 + $0x28] sm:$0xf] %vm953_vm2, %v1214_v45  ;;  %v729_v58 = vmul.f32 %v561_v27, %v561_v27  ;;  %v664_v60 = vadd.f32 %v663_v46, %v662_v51  ;;  %v765_v61 = vadd.f32 %v764_v53, %v763_v50  ;;  %v1215_v62 = vpack.c.bf16 %v564_v52, %v564_v52 }
 0x10c   : > { %v766_v55 = vsel %vm647_vm3, %v727_v47, 0.0  ;;  %962 = vst.msk [vmem:[%s1512_s20 + $0x20] sm:$0xf] %vm953_vm2, %v1212_v48  ;;  %v665_v63 = vsel %vm647_vm3, %v556_v56, 0.0  ;;  %v728_v1 = vmul.f32 %v556_v56, %v556_v56  ;;  %v1213_v2 = vpack.c.bf16 %v556_v56, %v556_v56 }
 0x10d   : > { %v667_v4 = vsel %vm647_vm3, %v561_v27, 0.0  ;;  %v767_v5 = vadd.f32 %v766_v55, %v765_v61  ;;  %v666_v7 = vadd.f32 %v665_v63, %v664_v60  ;;  %v730_v10 = vmul.f32 %v564_v52, %v564_v52  ;;  %965 = vst.msk [vmem:[%s1512_s20 + $0x2c] sm:$0xf] %vm953_vm2, %v1215_v62 }
 0x10e   : > { %v1287_v3 = vpop.f32.mrb[12].mxu0  ;;  %v1609_v40 = vpop.f32.mrb[12].mxu1  ;;  %v768_v12 = vsel %vm647_vm3, %v728_v1, 0.0  ;;  %963 = vst.msk [vmem:[%s1512_s20 + $0x24] sm:$0xf] %vm953_vm2, %v1213_v2  ;;  %v770_v18 = vsel %vm647_vm3, %v729_v58, 0.0  ;;  %v1640_v38 = vadd.f32 %v1541_v59, %v1504_v24  ;;  %v601_v45 = vadd.f32 %v1504_v24, %v1549_v0 }
 0x10f   : > { %v577_v8 = vadd.f32 %v1287_v3, %v1504_v24  ;;  %v568_v9 = vpop.f32.mrb[13].mxu0  ;;  %v1619_v17 = vpop.f32.mrb[13].mxu1  ;;  %v669_v19 = vsel %vm647_vm3, %v564_v52, 0.0  ;;  %v668_v20 = vadd.f32 %v667_v4, %v666_v7  ;;  %v769_v21 = vadd.f32 %v768_v12, %v767_v5 }
 0x110   : > { %v569_v13 = vadd.f32 %v1504_v24, %v568_v9  ;;  %v1288_v14 = vpop.f32.mrb[14].mxu0  ;;  %v1623_v23 = vpop.f32.mrb[14].mxu1  ;;  %v772_v34 = vsel %vm647_vm3, %v730_v10, 0.0  ;;  %v679_v53 = vsel %vm647_vm3, %v1538_v54, 0.0  ;;  %v735_v59 = vmul.f32 %v1538_v54, %v1538_v54 }
 0x111   : > { %v571_v22 = vpop.f32.mrb[15].mxu0  ;;  %v1218_v25 = vpack.c.bf16 %v577_v8, %v577_v8  ;;  %v1628_v29 = vpop.f32.mrb[15].mxu1  ;;  %v771_v31 = vadd.f32 %v770_v18, %v769_v21  ;;  %v670_v32 = vadd.f32 %v669_v19, %v668_v20  ;;  %v580_v33 = vadd.f32 %v1288_v14, %v1504_v24 }
 0x112   : > { %v671_v26 = vsel %vm647_vm3, %v569_v13, 0.0  ;;  %v731_v27 = vmul.f32 %v569_v13, %v569_v13  ;;  %v1216_v28 = vpack.c.bf16 %v569_v13, %v569_v13  ;;  %v572_v37 = vadd.f32 %v1504_v24, %v571_v22 }
 0x113   : > { %968 = vst.msk [vmem:[%s1512_s20 + $0x38] sm:$0xf] %vm953_vm2, %v1218_v25  ;;  %v733_v41 = vmul.f32 %v577_v8, %v577_v8  ;;  %v672_v42 = vadd.f32 %v671_v26, %v670_v32  ;;  %v773_v43 = vadd.f32 %v772_v34, %v771_v31  ;;  %v1219_v46 = vpack.c.bf16 %v580_v33, %v580_v33 }
 0x114   : > { %v774_v35 = vsel %vm647_vm3, %v731_v27, 0.0  ;;  %966 = vst.msk [vmem:[%s1512_s20 + $0x30] sm:$0xf] %vm953_vm2, %v1216_v28  ;;  %v673_v47 = vsel %vm647_vm3, %v572_v37, 0.0  ;;  %v732_v48 = vmul.f32 %v572_v37, %v572_v37  ;;  %v1217_v50 = vpack.c.bf16 %v572_v37, %v572_v37 }
 0x115   : > { %v775_v51 = vadd.f32 %v774_v35, %v773_v43  ;;  %v674_v52 = vadd.f32 %v673_v47, %v672_v42  ;;  %v675_v55 = vsel %vm647_vm3, %v577_v8, 0.0  ;;  %v734_v56 = vmul.f32 %v580_v33, %v580_v33  ;;  %969 = vst.msk [vmem:[%s1512_s20 + $0x3c] sm:$0xf] %vm953_vm2, %v1219_v46 }
 0x116   : > { %v776_v0 = vsel %vm647_vm3, %v732_v48, 0.0  ;;  %967 = vst.msk [vmem:[%s1512_s20 + $0x34] sm:$0xf] %vm953_vm2, %v1217_v50  ;;  %v1226_v58 = vpack.c.bf16 %v1640_v38, %v1640_v38  ;;  %v778_v60 = vsel %vm647_vm3, %v733_v41, 0.0  ;;  %v1224_v63 = vpack.c.bf16 %v601_v45, %v601_v45 }
 0x117   : > { %v676_v61 = vadd.f32 %v675_v55, %v674_v52  ;;  %v777_v62 = vadd.f32 %v776_v0, %v775_v51  ;;  %v677_v54 = vsel %vm647_vm3, %v580_v33, 0.0  ;;  %v1663_v1 = vadd.f32 %v1553_v6, %v1504_v24 }
 0x118   : > { %976 = vst.msk [vmem:[%s1512_s20 + $0x58] sm:$0xf] %vm953_vm2, %v1226_v58  ;;  %v604_v2 = vadd.f32 %v1504_v24, %v1558_v11  ;;  %v1669_v3 = vadd.f32 %v1576_v30, %v1504_v24  ;;  %v782_v7 = vsel %vm647_vm3, %v735_v59, 0.0  ;;  %974 = vst.msk [vmem:[%s1512_s20 + $0x50] sm:$0xf] %vm953_vm2, %v1224_v63  ;;  %v780_v8 = vsel %vm647_vm3, %v734_v56, 0.0 }
 0x119   : > { %v779_v4 = vadd.f32 %v778_v60, %v777_v62  ;;  %v678_v5 = vadd.f32 %v677_v54, %v676_v61  ;;  %v736_v6 = vmul.f32 %v1604_v57, %v1604_v57  ;;  %v1227_v9 = vpack.c.bf16 %v1663_v1, %v1663_v1 }
 0x11a   : > { %v617_v11 = vadd.f32 %v1504_v24, %v1583_v36  ;;  %v1225_v12 = vpack.c.bf16 %v604_v2, %v604_v2  ;;  %v737_v13 = vmul.f32 %v1518_v39, %v1518_v39  ;;  %v681_v14 = vsel %vm647_vm3, %v1604_v57, 0.0 }
 0x11b   : > { %v680_v30 = vadd.f32 %v679_v53, %v678_v5  ;;  %v781_v10 = vadd.f32 %v780_v8, %v779_v4  ;;  %977 = vst.msk [vmem:[%s1512_s20 + $0x5c] sm:$0xf] %vm953_vm2, %v1227_v9  ;;  %v1230_v16 = vpack.c.bf16 %v1669_v3, %v1669_v3  ;;  %v683_v18 = vsel %vm647_vm3, %v1518_v39, 0.0 }
 0x11c   : > { %v738_v36 = vmul.f32 %v1565_v15, %v1565_v15  ;;  %975 = vst.msk [vmem:[%s1512_s20 + $0x54] sm:$0xf] %vm953_vm2, %v1225_v12  ;;  %v784_v21 = vsel %vm647_vm3, %v736_v6, 0.0  ;;  %v739_v22 = vmul.f32 %v601_v45, %v601_v45  ;;  %v1228_v57 = vpack.c.bf16 %v617_v11, %v617_v11 }
 0x11d   : > { %v783_v19 = vadd.f32 %v782_v7, %v781_v10  ;;  %v682_v20 = vadd.f32 %v681_v14, %v680_v30  ;;  %980 = vst.msk [vmem:[%s1512_s20 + $0x68] sm:$0xf] %vm953_vm2, %v1230_v16  ;;  %v628_v25 = vadd.f32 %v1589_v44, %v1504_v24  ;;  %v620_v27 = vadd.f32 %v1504_v24, %v1592_v49 }
 0x11e   : > { %v1704_v28 = vadd.f32 %v1609_v40, %v1504_v24  ;;  %v786_v31 = vsel %vm647_vm3, %v737_v13, 0.0  ;;  %v685_v32 = vsel %vm647_vm3, %v1565_v15, 0.0  ;;  %v687_v33 = vsel %vm647_vm3, %v601_v45, 0.0  ;;  %978 = vst.msk [vmem:[%s1512_s20 + $0x60] sm:$0xf] %vm953_vm2, %v1228_v57 }
 0x11f   : > { %v684_v26 = vadd.f32 %v683_v18, %v682_v20  ;;  %v785_v39 = vadd.f32 %v784_v21, %v783_v19  ;;  %v1231_v44 = vpack.c.bf16 %v628_v25, %v628_v25  ;;  %v788_v37 = vsel %vm647_vm3, %v738_v36, 0.0 }
 0x120   : > { %v790_v49 = vsel %vm647_vm3, %v739_v22, 0.0  ;;  %v740_v40 = vmul.f32 %v604_v2, %v604_v2  ;;  %v1229_v41 = vpack.c.bf16 %v620_v27, %v620_v27  ;;  %v741_v15 = vmul.f32 %v1640_v38, %v1640_v38 }
 0x121   : > { %v787_v34 = vadd.f32 %v786_v31, %v785_v39  ;;  %v686_v35 = vadd.f32 %v685_v32, %v684_v26  ;;  %981 = vst.msk [vmem:[%s1512_s20 + $0x6c] sm:$0xf] %vm953_vm2, %v1231_v44  ;;  %v1234_v45 = vpack.c.bf16 %v1704_v28, %v1704_v28  ;;  %v689_v46 = vsel %vm647_vm3, %v604_v2, 0.0 }
 0x122   : > { %979 = vst.msk [vmem:[%s1512_s20 + $0x64] sm:$0xf] %vm953_vm2, %v1229_v41  ;;  %v633_v47 = vadd.f32 %v1504_v24, %v1619_v17  ;;  %v644_v48 = vadd.f32 %v1623_v23, %v1504_v24  ;;  %v636_v50 = vadd.f32 %v1504_v24, %v1628_v29  ;;  %v691_v51 = vsel %vm647_vm3, %v1640_v38, 0.0 }
 0x123   : > { %v688_v42 = vadd.f32 %v687_v33, %v686_v35  ;;  %v789_v43 = vadd.f32 %v788_v37, %v787_v34  ;;  %984 = vst.msk [vmem:[%s1512_s20 + $0x78] sm:$0xf] %vm953_vm2, %v1234_v45  ;;  %v742_v59 = vmul.f32 %v1663_v1, %v1663_v1  ;;  %v792_v17 = vsel %vm647_vm3, %v740_v40, 0.0 }
 0x124   : > { %v743_v55 = vmul.f32 %v617_v11, %v617_v11  ;;  %v1232_v23 = vpack.c.bf16 %v633_v47, %v633_v47  ;;  %v1235_v58 = vpack.c.bf16 %v644_v48, %v644_v48  ;;  %v794_v24 = vsel %vm647_vm3, %v741_v15, 0.0 }
 0x125   : > { %v791_v52 = vadd.f32 %v790_v49, %v789_v43  ;;  %v690_v53 = vadd.f32 %v689_v46, %v688_v42  ;;  %v693_v29 = vsel %vm647_vm3, %v1663_v1, 0.0  ;;  %v695_v38 = vsel %vm647_vm3, %v617_v11, 0.0 }
 0x126   : > { %982 = vst.msk [vmem:[%s1512_s20 + $0x70] sm:$0xf] %vm953_vm2, %v1232_v23  ;;  %v1233_v60 = vpack.c.bf16 %v636_v50, %v636_v50  ;;  %985 = vst.msk [vmem:[%s1512_s20 + $0x7c] sm:$0xf] %vm953_vm2, %v1235_v58  ;;  %v796_v63 = vsel %vm647_vm3, %v742_v59, 0.0  ;;  %v798_v54 = vsel %vm647_vm3, %v743_v55, 0.0  ;;  %v744_v2 = vmul.f32 %v620_v27, %v620_v27 }
 0x127   : > { %v692_v56 = vadd.f32 %v691_v51, %v690_v53  ;;  %v793_v0 = vadd.f32 %v792_v17, %v791_v52  ;;  %v745_v1 = vmul.f32 %v1669_v3, %v1669_v3  ;;  %v697_v7 = vsel %vm647_vm3, %v620_v27, 0.0 }
 0x128   : > { %983 = vst.msk [vmem:[%s1512_s20 + $0x74] sm:$0xf] %vm953_vm2, %v1233_v60  ;;  %v699_v9 = vsel %vm647_vm3, %v1669_v3, 0.0  ;;  %v746_v11 = vmul.f32 %v628_v25, %v628_v25  ;;  %v800_v30 = vsel %vm647_vm3, %v744_v2, 0.0  ;;  %v747_v10 = vmul.f32 %v633_v47, %v633_v47 }
 0x129   : > { %v795_v61 = vadd.f32 %v794_v24, %v793_v0  ;;  %v694_v62 = vadd.f32 %v693_v29, %v692_v56  ;;  %v802_v14 = vsel %vm647_vm3, %v745_v1, 0.0  ;;  %v701_v16 = vsel %vm647_vm3, %v628_v25, 0.0 }
 0x12a   : > { %v703_v18 = vsel %vm647_vm3, %v633_v47, 0.0  ;;  %v804_v20 = vsel %vm647_vm3, %v746_v11, 0.0  ;;  %v806_v21 = vsel %vm647_vm3, %v747_v10, 0.0  ;;  %v748_v22 = vmul.f32 %v636_v50, %v636_v50 }
 0x12b   : > { %v696_v4 = vadd.f32 %v695_v38, %v694_v62  ;;  %v797_v5 = vadd.f32 %v796_v63, %v795_v61  ;;  %v749_v26 = vmul.f32 %v1704_v28, %v1704_v28  ;;  %v705_v39 = vsel %vm647_vm3, %v636_v50, 0.0 }
 0x12c   : > { %v707_v25 = vsel %vm647_vm3, %v1704_v28, 0.0  ;;  %v750_v32 = vmul.f32 %v644_v48, %v644_v48  ;;  %v808_v33 = vsel %vm647_vm3, %v748_v22, 0.0  ;;  %v709_v37 = vsel %vm647_vm3, %v644_v48, 0.0 }
 0x12d   : > { %v799_v8 = vadd.f32 %v798_v54, %v797_v5  ;;  %v698_v6 = vadd.f32 %v697_v7, %v696_v4  ;;  %v810_v35 = vsel %vm647_vm3, %v749_v26, 0.0 }
 0x12e   : > { %v812_v41 = vsel %vm647_vm3, %v750_v32, 0.0 }
 0x12f   : > { %v700_v12 = vadd.f32 %v699_v9, %v698_v6  ;;  %v801_v13 = vadd.f32 %v800_v30, %v799_v8 }
 0x131   : > { %v803_v19 = vadd.f32 %v802_v14, %v801_v13  ;;  %v702_v36 = vadd.f32 %v701_v16, %v700_v12 }
 0x133   : > { %v704_v3 = vadd.f32 %v703_v18, %v702_v36  ;;  %v805_v57 = vadd.f32 %v804_v20, %v803_v19 }
 0x135   : > { %v807_v27 = vadd.f32 %v806_v21, %v805_v57  ;;  %v706_v31 = vadd.f32 %v705_v39, %v704_v3 }
 0x137   : > { %v708_v44 = vadd.f32 %v707_v25, %v706_v31  ;;  %v809_v34 = vadd.f32 %v808_v33, %v807_v27 }
 0x139   : > { %v710_v49 = vadd.f32 %v709_v37, %v708_v44  ;;  %v811_v40 = vadd.f32 %v810_v35, %v809_v34 }
 0x13b   : > { %v711_v15 = vrot.slane %v710_v49, 4  ;;  %v813_v42 = vadd.f32 %v812_v41, %v811_v40 }
 0x13d   : > { %v712_v43 = vadd.f32 %v711_v15, %v710_v49  ;;  %v814_v45 = vrot.slane %v813_v42, 4 }
 0x13f   : > { %v713_v28 = vrot.slane %v712_v43, 2  ;;  %v815_v46 = vadd.f32 %v814_v45, %v813_v42 }
 0x141   : > { %v714_v47 = vadd.f32 %v713_v28, %v712_v43  ;;  %v816_v50 = vrot.slane %v815_v46, 2 }
 0x143   : > { %v715_v51 = vrot.slane %v714_v47, 1  ;;  %v817_v52 = vadd.f32 %v816_v50, %v815_v46 }
 0x145   : > { %v716_v53 = vadd.f32 %v715_v51, %v714_v47  ;;  %v818_v59 = vrot.slane %v817_v52, 1 }
 0x147   : > { %v819_v48 = vadd.f32 %v818_v59, %v817_v52  ;;  %v718_v17 = vmul.f32 0.00390625, %v716_v53 }
 0x149   : > { %v820_v55 = vmul.f32 0.00390625, %v819_v48 }
 0x14b   : > { %v822_v23 = vsel %vm821_vm4, %v718_v17, %v820_v55 }
 0x14c   : > { %824 = vst.msk [vmem:[%s257_s24] sm:$0x3] %vm823_vm5, %v822_v23 }
 0x14d PF: > { %s15_s17 = sadd.s32 1, %s1390_s17   ;;  %s1787_s15 = smov %s1386_s16 }
 0x14e   : > { %p12_p6 = scmp.ge.s32.totalorder %s15_s17, 6   ;;  %s1788_s16 = smov %s1790_s18 }
 0x150   :  { %14 = sbr.rel (!%p12_p6) target bundleno = 2 (0x2), region = 74 }

// kernel: dsc_conv_forward.9
= control target key start
LH: loop header
LB: loop body
LE: loop exit
PB: predicated region body
PF: predicated region fallthrough
CT: control target
= control target key end

     0   :  { %v63_v0 = vlaneseq  ;;  %s808_s0 = inlined_call_operand.vmem [shape: bf16[1,8,3456], index: 0, kind: input, shape index: {}]   ;;  %s809_s1 = inlined_call_operand.vmem [shape: f32[1,1,3456], index: 1, kind: input, shape index: {}]   ;;  %s810_s2 = inlined_call_operand.vmem [shape: f32[1,1,3456], index: 2, kind: input, shape index: {}]   ;;  %s811_s3 = inlined_call_operand.vmem [shape: f32[1,8,3456], index: 3, kind: output, shape index: {}]  }
   0x1   :  { %v14_v1 = vld [vmem:[%s808_s0] sm:$0xff]  ;;  %v15_v5 = vld [vmem:[%s808_s0 + $0x8] sm:$0xff]  ;;  %v16_v6 = vld [vmem:[%s808_s0 + $0x10] sm:$0xff] }
   0x2   :  { %v28_v2 = vunpack.c.l.bf16 %v14_v1  ;;  %v64_v3 = vshrl.u32 %v63_v0, 7  ;;  %v29_v4 = vunpack.c.h.bf16 %v14_v1  ;;  %v539_v7 = vld [vmem:[%s808_s0 + $0x18] sm:$0xff]  ;;  %v544_v8 = vld [vmem:[%s809_s1] sm:$0xff]  ;;  %v30_v10 = vunpack.c.l.bf16 %v15_v5  ;;  %v600_v47 = vld [vmem:[%s809_s1 + $0x8] sm:$0xff] }
   0x3   :  { %v549_v9 = vld [vmem:[%s810_s2] sm:$0xff]  ;;  %v31_v11 = vunpack.c.h.bf16 %v15_v5  ;;  %v32_v12 = vunpack.c.l.bf16 %v16_v6  ;;  %v33_v13 = vunpack.c.h.bf16 %v16_v6  ;;  %v34_v20 = vunpack.c.l.bf16 %v539_v7  ;;  %v605_v48 = vld [vmem:[%s810_s2 + $0x8] sm:$0xff] }
   0x4   :  { %v551_v14 = vsub.s32 0, %v64_v3  ;;  %v553_v15 = vsub.s32 1, %v64_v3  ;;  %v555_v16 = vsub.s32 2, %v64_v3  ;;  %v557_v17 = vsub.s32 3, %v64_v3  ;;  %v18_v42 = vld [vmem:[%s808_s0 + $0x20] sm:$0xff]  ;;  %v19_v58 = vld [vmem:[%s808_s0 + $0x28] sm:$0xff] }
   0x5   :  { %v559_v18 = vsub.s32 4, %v64_v3  ;;  %v561_v19 = vsub.s32 5, %v64_v3  ;;  %v564_v21 = vsub.s32 6, %v64_v3  ;;  %v35_v51 = vunpack.c.h.bf16 %v539_v7 }
   0x6   :  { %v66_v22 = vrot.slane %v544_v8, %v551_v14  ;;  %v236_v23 = vrot.slane %v549_v9, %v551_v14  ;;  %v70_v24 = vrot.slane %v544_v8, %v553_v15  ;;  %v240_v25 = vrot.slane %v549_v9, %v553_v15 }
   0x7   :  { %v74_v26 = vrot.slane %v544_v8, %v555_v16  ;;  %v244_v27 = vrot.slane %v549_v9, %v555_v16  ;;  %v78_v28 = vrot.slane %v544_v8, %v557_v17  ;;  %v248_v29 = vrot.slane %v549_v9, %v557_v17 }
   0x8   :  { %v198_v30 = vmul.f32 %v66_v22, %v28_v2  ;;  %v199_v31 = vmul.f32 %v70_v24, %v29_v4  ;;  %v82_v32 = vrot.slane %v544_v8, %v559_v18  ;;  %v252_v33 = vrot.slane %v549_v9, %v559_v18  ;;  %v20_v4 = vld [vmem:[%s808_s0 + $0x30] sm:$0xff] }
   0x9   :  { %v200_v34 = vmul.f32 %v74_v26, %v30_v10  ;;  %v201_v35 = vmul.f32 %v78_v28, %v31_v11  ;;  %v86_v36 = vrot.slane %v544_v8, %v561_v19  ;;  %v256_v37 = vrot.slane %v549_v9, %v561_v19 }
   0xa   :  { %v368_v38 = vadd.f32 %v236_v23, %v198_v30  ;;  %v369_v39 = vadd.f32 %v240_v25, %v199_v31  ;;  %v202_v40 = vmul.f32 %v82_v32, %v32_v12  ;;  %v90_v41 = vrot.slane %v544_v8, %v564_v21  ;;  %v21_v25 = vld [vmem:[%s808_s0 + $0x38] sm:$0xff] }
   0xb   :  { %v370_v43 = vadd.f32 %v244_v27, %v200_v34  ;;  %v371_v44 = vadd.f32 %v248_v29, %v201_v35  ;;  %v203_v45 = vmul.f32 %v86_v36, %v33_v13  ;;  %v260_v46 = vrot.slane %v549_v9, %v564_v21  ;;  %v22_v34 = vld [vmem:[%s808_s0 + $0x40] sm:$0xff] }
   0xc   :  { %453 = vtanh.f32 %v368_v38  ;;  %v372_v49 = vadd.f32 %v252_v33, %v202_v40  ;;  %v204_v50 = vmul.f32 %v90_v41, %v34_v20  ;;  %v608_v53 = vsub.s32 7, %v64_v3  ;;  %v663_v40 = vld [vmem:[%s809_s1 + $0x10] sm:$0xff] }
   0xd   :  { %455 = vtanh.f32 %v369_v39  ;;  %v373_v52 = vadd.f32 %v256_v37, %v203_v45  ;;  %v36_v54 = vunpack.c.l.bf16 %v18_v42  ;;  %v98_v56 = vrot.slane %v600_v47, %v551_v14  ;;  %v668_v41 = vld [vmem:[%s810_s2 + $0x10] sm:$0xff] }
   0xe   :  { %457 = vtanh.f32 %v370_v43  ;;  %v374_v55 = vadd.f32 %v260_v46, %v204_v50  ;;  %v268_v57 = vrot.slane %v605_v48, %v551_v14  ;;  %v94_v59 = vrot.slane %v544_v8, %v608_v53 }
   0xf   :  { %459 = vtanh.f32 %v371_v44  ;;  %v264_v60 = vrot.slane %v549_v9, %v608_v53  ;;  %v37_v61 = vunpack.c.h.bf16 %v18_v42  ;;  %v206_v62 = vmul.f32 %v98_v56, %v36_v54  ;;  %v23_v54 = vld [vmem:[%s808_s0 + $0x48] sm:$0xff] }
  0x10   :  { %461 = vtanh.f32 %v372_v49  ;;  %v102_v63 = vrot.slane %v600_v47, %v553_v15  ;;  %v272_v0 = vrot.slane %v605_v48, %v553_v15  ;;  %v205_v1 = vmul.f32 %v94_v59, %v35_v51 }
  0x11   :  { %463 = vtanh.f32 %v373_v52  ;;  %v38_v2 = vunpack.c.l.bf16 %v19_v58  ;;  %v106_v3 = vrot.slane %v600_v47, %v555_v16  ;;  %v376_v5 = vadd.f32 %v268_v57, %v206_v62 }
  0x12   :  { %465 = vtanh.f32 %v374_v55  ;;  %v207_v6 = vmul.f32 %v102_v63, %v37_v61  ;;  %v276_v7 = vrot.slane %v605_v48, %v555_v16  ;;  %v375_v8 = vadd.f32 %v264_v60, %v205_v1  ;;  %v24_v1 = vld [vmem:[%s808_s0 + $0x50] sm:$0xff] }
  0x13   :  { %v208_v9 = vmul.f32 %v106_v3, %v38_v2  ;;  %v39_v10 = vunpack.c.h.bf16 %v19_v58  ;;  %v110_v11 = vrot.slane %v600_v47, %v557_v17  ;;  %467 = vtanh.f32 %v376_v5 }
  0x14   :  { %v377_v12 = vadd.f32 %v272_v0, %v207_v6  ;;  %v280_v13 = vrot.slane %v605_v48, %v557_v17  ;;  %v40_v20 = vunpack.c.l.bf16 %v20_v4  ;;  %469 = vtanh.f32 %v375_v8 }
  0x15   :  { %v378_v22 = vadd.f32 %v276_v7, %v208_v9  ;;  %v209_v23 = vmul.f32 %v110_v11, %v39_v10  ;;  %v114_v24 = vrot.slane %v600_v47, %v559_v18  ;;  %v284_v27 = vrot.slane %v605_v48, %v559_v18 }
  0x16   :  { %v454_v26 = vpop.eup %453  ;;  %471 = vtanh.f32 %v377_v12  ;;  %v41_v28 = vunpack.c.h.bf16 %v20_v4  ;;  %v118_v29 = vrot.slane %v600_v47, %v561_v19  ;;  %v288_v33 = vrot.slane %v605_v48, %v561_v19 }
  0x17   :  { %v456_v30 = vpop.eup %455  ;;  %422 = vst [vmem:[%s811_s3] sm:$0xff] %v454_v26  ;;  %473 = vtanh.f32 %v378_v22  ;;  %v379_v31 = vadd.f32 %v280_v13, %v209_v23  ;;  %v210_v32 = vmul.f32 %v114_v24, %v40_v20  ;;  %v42_v37 = vunpack.c.l.bf16 %v21_v25  ;;  %v25_v22 = vld [vmem:[%s808_s0 + $0x58] sm:$0xff] }
  0x18   :  { %v458_v35 = vpop.eup %457  ;;  %423 = vst [vmem:[%s811_s3 + $0x8] sm:$0xff] %v456_v30  ;;  %v211_v36 = vmul.f32 %v118_v29, %v41_v28  ;;  %v122_v38 = vrot.slane %v600_v47, %v564_v21  ;;  %v292_v39 = vrot.slane %v605_v48, %v564_v21  ;;  %v43_v44 = vunpack.c.h.bf16 %v21_v25 }
  0x19   :  { %v460_v42 = vpop.eup %459  ;;  %424 = vst [vmem:[%s811_s3 + $0x10] sm:$0xff] %v458_v35  ;;  %475 = vtanh.f32 %v379_v31  ;;  %v380_v43 = vadd.f32 %v284_v27, %v210_v32  ;;  %v126_v45 = vrot.slane %v600_v47, %v608_v53  ;;  %v296_v51 = vrot.slane %v605_v48, %v608_v53 }
  0x1a   :  { %v462_v46 = vpop.eup %461  ;;  %425 = vst [vmem:[%s811_s3 + $0x18] sm:$0xff] %v460_v42  ;;  %v381_v49 = vadd.f32 %v288_v33, %v211_v36  ;;  %v212_v50 = vmul.f32 %v122_v38, %v42_v37  ;;  %v44_v52 = vunpack.c.l.bf16 %v22_v34  ;;  %v130_v56 = vrot.slane %v663_v40, %v551_v14  ;;  %v228_v37 = vld [vmem:[%s810_s2 + $0x18] sm:$0x7] }
  0x1b   :  { %v464_v55 = vpop.eup %463  ;;  %426 = vst [vmem:[%s811_s3 + $0x20] sm:$0xff] %v462_v46  ;;  %477 = vtanh.f32 %v380_v43  ;;  %v213_v47 = vmul.f32 %v126_v45, %v43_v44  ;;  %v300_v57 = vrot.slane %v668_v41, %v551_v14  ;;  %v45_v59 = vunpack.c.h.bf16 %v22_v34 }
  0x1c   :  { %v466_v58 = vpop.eup %465  ;;  %427 = vst [vmem:[%s811_s3 + $0x28] sm:$0xff] %v464_v55  ;;  %479 = vtanh.f32 %v381_v49  ;;  %v382_v48 = vadd.f32 %v292_v39, %v212_v50  ;;  %v134_v60 = vrot.slane %v663_v40, %v553_v15  ;;  %v214_v62 = vmul.f32 %v130_v56, %v44_v52  ;;  %v27_v50 = vld [vmem:[%s808_s0 + $0x68] sm:$0xf] }
  0x1d   :  { %428 = vst [vmem:[%s811_s3 + $0x30] sm:$0xff] %v466_v58  ;;  %v383_v61 = vadd.f32 %v296_v51, %v213_v47  ;;  %v304_v63 = vrot.slane %v668_v41, %v553_v15  ;;  %v46_v0 = vunpack.c.l.bf16 %v23_v54  ;;  %v468_v2 = vpop.eup %467  ;;  %v138_v4 = vrot.slane %v663_v40, %v555_v16 }
  0x1e   :  { %481 = vtanh.f32 %v382_v48  ;;  %v215_v3 = vmul.f32 %v134_v60, %v45_v59  ;;  %v308_v5 = vrot.slane %v668_v41, %v555_v16  ;;  %v470_v6 = vpop.eup %469  ;;  %430 = vst [vmem:[%s811_s3 + $0x40] sm:$0xff] %v468_v2  ;;  %v384_v7 = vadd.f32 %v300_v57, %v214_v62 }
  0x1f   :  { %483 = vtanh.f32 %v383_v61  ;;  %v47_v8 = vunpack.c.h.bf16 %v23_v54  ;;  %v142_v9 = vrot.slane %v663_v40, %v557_v17  ;;  %429 = vst [vmem:[%s811_s3 + $0x38] sm:$0xff] %v470_v6  ;;  %v216_v12 = vmul.f32 %v138_v4, %v46_v0 }
  0x20   :  { %v472_v10 = vpop.eup %471  ;;  %v385_v11 = vadd.f32 %v304_v63, %v215_v3  ;;  %v312_v13 = vrot.slane %v668_v41, %v557_v17  ;;  %v48_v20 = vunpack.c.l.bf16 %v24_v1  ;;  %485 = vtanh.f32 %v384_v7 }
  0x21   :  { %v474_v23 = vpop.eup %473  ;;  %431 = vst [vmem:[%s811_s3 + $0x48] sm:$0xff] %v472_v10  ;;  %v217_v24 = vmul.f32 %v142_v9, %v47_v8  ;;  %v146_v25 = vrot.slane %v663_v40, %v559_v18  ;;  %v316_v26 = vrot.slane %v668_v41, %v559_v18  ;;  %v386_v17 = vadd.f32 %v308_v5, %v216_v12  ;;  %v26_v18 = vld [vmem:[%s808_s0 + $0x60] sm:$0xff] }
  0x22   :  { %432 = vst [vmem:[%s811_s3 + $0x50] sm:$0xff] %v474_v23  ;;  %487 = vtanh.f32 %v385_v11  ;;  %v49_v27 = vunpack.c.h.bf16 %v24_v1  ;;  %v150_v28 = vrot.slane %v663_v40, %v561_v19  ;;  %v320_v32 = vrot.slane %v668_v41, %v561_v19  ;;  %v58_v19 = vld [vmem:[%s809_s1 + $0x18] sm:$0x7] }
  0x23   :  { %v476_v29 = vpop.eup %475  ;;  %v387_v30 = vadd.f32 %v312_v13, %v217_v24  ;;  %v218_v31 = vmul.f32 %v146_v25, %v48_v20  ;;  %v50_v33 = vunpack.c.l.bf16 %v25_v22  ;;  %489 = vtanh.f32 %v386_v17 }
  0x24   :  { %433 = vst [vmem:[%s811_s3 + $0x58] sm:$0xff] %v476_v29  ;;  %v219_v34 = vmul.f32 %v150_v28, %v49_v27  ;;  %v154_v35 = vrot.slane %v663_v40, %v564_v21  ;;  %v324_v36 = vrot.slane %v668_v41, %v564_v21  ;;  %v51_v42 = vunpack.c.h.bf16 %v25_v22 }
  0x25   :  { %v478_v38 = vpop.eup %477  ;;  %491 = vtanh.f32 %v387_v30  ;;  %v388_v39 = vadd.f32 %v316_v26, %v218_v31  ;;  %v158_v43 = vrot.slane %v663_v40, %v608_v53  ;;  %v328_v46 = vrot.slane %v668_v41, %v608_v53 }
  0x26   :  { %v480_v44 = vpop.eup %479  ;;  %434 = vst [vmem:[%s811_s3 + $0x60] sm:$0xff] %v478_v38  ;;  %v389_v21 = vadd.f32 %v320_v32, %v219_v34  ;;  %v220_v45 = vmul.f32 %v154_v35, %v50_v33  ;;  %v52_v49 = vunpack.c.l.bf16 %v26_v18  ;;  %v162_v51 = vrot.slane %v58_v19, %v551_v14 }
  0x27   :  { %435 = vst [vmem:[%s811_s3 + $0x68] sm:$0xff] %v480_v44  ;;  %493 = vtanh.f32 %v388_v39  ;;  %v221_v40 = vmul.f32 %v158_v43, %v51_v42  ;;  %v332_v52 = vrot.slane %v228_v37, %v551_v14  ;;  %v53_v47 = vunpack.c.h.bf16 %v26_v18 }
  0x28   :  { %v482_v54 = vpop.eup %481  ;;  %495 = vtanh.f32 %v389_v21  ;;  %v390_v55 = vadd.f32 %v324_v36, %v220_v45  ;;  %v166_v53 = vrot.slane %v58_v19, %v553_v15  ;;  %v222_v57 = vmul.f32 %v162_v51, %v52_v49 }
  0x29   :  { %v484_v41 = vpop.eup %483  ;;  %436 = vst [vmem:[%s811_s3 + $0x70] sm:$0xff] %v482_v54  ;;  %v391_v56 = vadd.f32 %v328_v46, %v221_v40  ;;  %v336_v58 = vrot.slane %v228_v37, %v553_v15  ;;  %v54_v48 = vunpack.c.l.bf16 %v27_v50  ;;  %v170_v59 = vrot.slane %v58_v19, %v555_v16 }
  0x2a   :  { %437 = vst [vmem:[%s811_s3 + $0x78] sm:$0xff] %v484_v41  ;;  %497 = vtanh.f32 %v390_v55  ;;  %v223_v14 = vmul.f32 %v166_v53, %v53_v47  ;;  %v340_v60 = vrot.slane %v228_v37, %v555_v16  ;;  %v486_v61 = vpop.eup %485  ;;  %v392_v62 = vadd.f32 %v332_v52, %v222_v57 }
  0x2b   :  { %499 = vtanh.f32 %v391_v56  ;;  %438 = vst [vmem:[%s811_s3 + $0x80] sm:$0xff] %v486_v61  ;;  %v224_v0 = vmul.f32 %v170_v59, %v54_v48 }
  0x2c   :  { %v488_v63 = vpop.eup %487  ;;  %v393_v15 = vadd.f32 %v336_v58, %v223_v14  ;;  %501 = vtanh.f32 %v392_v62 }
  0x2d   :  { %439 = vst [vmem:[%s811_s3 + $0x88] sm:$0xff] %v488_v63  ;;  %v490_v1 = vpop.eup %489  ;;  %v394_v2 = vadd.f32 %v340_v60, %v224_v0 }
  0x2e   :  { %503 = vtanh.f32 %v393_v15  ;;  %440 = vst [vmem:[%s811_s3 + $0x90] sm:$0xff] %v490_v1 }
  0x2f   :  { %v492_v3 = vpop.eup %491  ;;  %505 = vtanh.f32 %v394_v2 }
  0x30   :  { %441 = vst [vmem:[%s811_s3 + $0x98] sm:$0xff] %v492_v3 }
  0x31   :  { %v494_v16 = vpop.eup %493 }
  0x32   :  { %v496_v4 = vpop.eup %495  ;;  %442 = vst [vmem:[%s811_s3 + $0xa0] sm:$0xff] %v494_v16 }
  0x33   :  { %443 = vst [vmem:[%s811_s3 + $0xa8] sm:$0xff] %v496_v4 }
  0x34   :  { %v498_v5 = vpop.eup %497 }
  0x35   :  { %v500_v6 = vpop.eup %499  ;;  %444 = vst [vmem:[%s811_s3 + $0xb0] sm:$0xff] %v498_v5 }
  0x36   :  { %445 = vst [vmem:[%s811_s3 + $0xb8] sm:$0xff] %v500_v6  ;;  %v502_v7 = vpop.eup %501 }
  0x37   :  { %446 = vst [vmem:[%s811_s3 + $0xc0] sm:$0xff] %v502_v7 }
  0x38   :  { %v504_v8 = vpop.eup %503 }
  0x39   :  { %447 = vst [vmem:[%s811_s3 + $0xc8] sm:$0xff] %v504_v8  ;;  %v506_v9 = vpop.eup %505 }
  0x3a   :  { %448 = vst [vmem:[%s811_s3 + $0xd0] sm:$0xff] %v506_v9 }

// kernel: dsc_conv_forward.10
= control target key start
LH: loop header
LB: loop body
LE: loop exit
PB: predicated region body
PF: predicated region fallthrough
CT: control target
= control target key end

     0   :  { %s1365_s15 = smov 0   ;;  %s1367_s16 = smov 0   ;;  %s1716_s0 = inlined_call_operand.vmem [shape: bf16[2,512,12], index: 0, kind: input, shape index: {}]   ;;  %s1717_s1 = inlined_call_operand.vmem [shape: bf16[12,8], index: 1, kind: input, shape index: {}]   ;;  %s1718_s2 = inlined_call_operand.vmem [shape: f32[1,8], index: 2, kind: input, shape index: {}]   ;;  %s1719_s3 = inlined_call_operand.vmem [shape: bf16[2,512,8], index: 3, kind: output, shape index: {0}]   ;;  %s1720_s4 = inlined_call_operand.vmem [shape: f32[2,2,2,8], index: 4, kind: output, shape index: {1}]  }
   0x1   :  { %s1369_s17 = smov 0   ;;  %s1371_s18 = smov 0  }
   0x2   :  { %s1373_s19 = smov 0  }
   0x3 LB: > { %s24_s20 = sadd.s32 1, %s1330_s17  ;;  %s27_s21 = sadd.s32 1, %s1334_s18  ;;  %s1338_s19 = sphi %s1373_s19, %s15_s19   ;;  %s1334_s18 = sphi %s1371_s18, %s1724_s18   ;;  %s1330_s17 = sphi %s1369_s17, %s1723_s17   ;;  %s1326_s16 = sphi %s1367_s16, %s1722_s16   ;;  %s1322_s15 = sphi %s1365_s15, %s1721_s15  }
   0x4   : > { %p25_p0 = scmp.ge.s32.totalorder %s24_s20, 2  ;;  %p1079_p1 = scmp.ge.s32.totalorder %s1338_s19, 1 }
   0x5   : > { %p188_p2 = scmp.lt.s32.totalorder %s1338_s19, 5 }
   0x6   : > { %s1726_s20 = smov (%p25_p0, %s24_s20), 0  ;;  %s1728_s21 = smov (!%p25_p0, %s27_s21), %s1334_s18 }
   0x7   : > { %p189_p3 = pnand %p1079_p1, %p188_p2  ;;  %p29_p4 = scmp.ge.s32.totalorder %s1728_s21, 2 }
   0x8   : > { %v1283_v0 = vld [vmem:[%s1717_s1] sm:$0x3f] (!%p189_p3)   ;;  %vm434_vm0 = vcmask (!%p189_p3), 1045504   ;;  %s1080_s24 = sshll.u32 (!%p189_p3), %s1322_s15, 5  ;;  %p231_p5 = scmp.lt.s32.totalorder (!%p189_p3), %s1326_s16, 1  ;;  %vm385_vm1 = vcmask (!%p189_p3), 97280  }
   0x9   : > { %s1730_s21 = smov (%p29_p4, %s1728_s21), 0  ;;  %192 = sbr.rel (%p189_p3) target bundleno = 321 (0x141), region = 32 }
   0xa   : > { %1241 = vmatprep.subr.msk.bf16.mxu0 (!%p189_p3), %vm434_vm0, %v1283_v0  ;;  %v436_v1 = vsel (!%p189_p3), %vm434_vm0, %v1283_v0, 0  ;;  %p233_p6 = scmp.lt.s32.totalorder (!%p189_p3), %s1080_s24, 63  ;;  %1242 = vmatprep.subr.msk.bf16.mxu1 (!%p189_p3), %vm434_vm0, %v1283_v0  ;;  %v1449_v18 = vld [vmem:[%s1718_s2] ss:$0 sm:$0xff] (!%p189_p3)  ;;  %vm905_vm2 = vcmask (!%p189_p3), 60416   ;;  %vm599_vm3 = vcmask (!%p189_p3), 64512  }
   0xb   : > { %1206 = vmatpush3.bf16.msra.mxu0 (!%p189_p3), %v436_v1  ;;  %1240 = vmatpush3.bf16.msra.mxu1 (!%p189_p3), %v436_v1  ;;  %p252_p7 = scmp.lt.s32.totalorder (!%p189_p3), %s1322_s15, 1  ;;  %vm773_vm4 = vcmask (!%p189_p3), 1040384   ;;  %vm775_vm5 = vcmask (!%p189_p3), 58368  }
  0x10   : > { %s1732_s16 = smov (!%p231_p5, %s1326_s16), 1  ;;  %s1734_s24 = smov (!%p233_p6, %s1080_s24), 63 }
  0x11   : > { %s1081_s25 = sshll.u32 %s1732_s16, 6  ;;  %s1736_s15 = smov (!%p252_p7, %s1322_s15), 1 }
  0x12   : > { %s1404_s26 = sadd.s32 %s1081_s25, %s1734_s24  ;;  %s1086_s10 = sshll.u32 %s1732_s16, 1 }
  0x13   : > { %s1082_s27 = sshll.u32 %s1404_s26, 2  ;;  %s255_s11 = sadd.s32 %s1086_s10, %s1736_s15 }
  0x14   : > { %s1412_s30 = scalar_lea.vmem %s1716_s0, %s1082_s27  ;;  %s1457_s9 = scalar_lea.vmem %s1719_s3, %s1082_s27 }
  0x15   : > { %v1284_v2 = vld [vmem:[%s1412_s30] sm:$0xff]   ;;  %v1285_v3 = vld [vmem:[%s1412_s30 + $0x8] sm:$0xff]   ;;  %v1286_v4 = vld [vmem:[%s1412_s30 + $0x10] sm:$0xff]   ;;  %s1087_s12 = sshll.u32 %s255_s11, 1 }
  0x16   : > { %1207 = vmatprep.mubr.msk.bf16.mxu0 %vm385_vm1, %v1284_v2  ;;  %v1287_v5 = vld [vmem:[%s1412_s30 + $0x18] sm:$0xff]   ;;  %v1288_v6 = vld [vmem:[%s1412_s30 + $0x20] sm:$0xff]   ;;  %v1293_v8 = vld [vmem:[%s1412_s30 + $0x48] sm:$0xff]   ;;  %s257_s22 = scalar_lea.vmem %s1720_s4, %s1087_s12 }
  0x17   : > { %1208 = vmatmul.mubr.msk.bf16.vlgmr.msra.gmra.mrb[0].mxu0 %vm385_vm1, %v1285_v3  ;;  %v1292_v7 = vld [vmem:[%s1412_s30 + $0x40] sm:$0xff]   ;;  %v1294_v9 = vld [vmem:[%s1412_s30 + $0x50] sm:$0xff]   ;;  %v1289_v10 = vld [vmem:[%s1412_s30 + $0x28] sm:$0xff]  }
  0x18   : > { %1211 = vmatprep.mubr.msk.bf16.mxu0 %vm385_vm1, %v1286_v4  ;;  %1223 = vmatprep.mubr.msk.bf16.mxu1 %vm385_vm1, %v1292_v7  ;;  %v1295_v11 = vld [vmem:[%s1412_s30 + $0x58] sm:$0xff]   ;;  %v1290_v12 = vld [vmem:[%s1412_s30 + $0x30] sm:$0xff]   ;;  %v1296_v13 = vld [vmem:[%s1412_s30 + $0x60] sm:$0xff]  }
  0x19   : > { %1224 = vmatmul.mubr.msk.bf16.vlgmr.msra.gmra.mrb[0].mxu1 %vm385_vm1, %v1293_v8  ;;  %v1291_v14 = vld [vmem:[%s1412_s30 + $0x38] sm:$0xff]   ;;  %v1297_v15 = vld [vmem:[%s1412_s30 + $0x68] sm:$0xff]   ;;  %v1298_v16 = vld [vmem:[%s1412_s30 + $0x70] sm:$0xff]  }
  0x1a   : > { %1227 = vmatprep.mubr.msk.bf16.mxu1 %vm385_vm1, %v1294_v9  ;;  %v1299_v17 = vld [vmem:[%s1412_s30 + $0x78] sm:$0xff]  }
  0x1f   : > { %1212 = vmatmul.mubr.msk.bf16.gmra.mrb[4].mxu0 %vm385_vm1, %v1287_v5 }
  0x20   : > { %1215 = vmatprep.mubr.msk.bf16.mxu0 %vm385_vm1, %v1288_v6 }
  0x21   : > { %1228 = vmatmul.mubr.msk.bf16.gmra.mrb[4].mxu1 %vm385_vm1, %v1295_v11 }
  0x22   : > { %1231 = vmatprep.mubr.msk.bf16.mxu1 %vm385_vm1, %v1296_v13 }
  0x27   : > { %1216 = vmatmul.mubr.msk.bf16.gmra.mrb[8].mxu0 %vm385_vm1, %v1289_v10 }
  0x28   : > { %1219 = vmatprep.mubr.msk.bf16.mxu0 %vm385_vm1, %v1290_v12 }
  0x29   : > { %1232 = vmatmul.mubr.msk.bf16.gmra.mrb[8].mxu1 %vm385_vm1, %v1297_v15 }
  0x2a   : > { %1235 = vmatprep.mubr.msk.bf16.mxu1 %vm385_vm1, %v1298_v16 }
  0x2f   : > { %1220 = vmatmul.mubr.msk.bf16.gmra.mrb[12].mxu0 %vm385_vm1, %v1291_v14 }
  0x31   : > { %1236 = vmatmul.mubr.msk.bf16.gmra.mrb[12].mxu1 %vm385_vm1, %v1299_v17 }
  0xea   : > { %v1209_v19 = vpop.f32.mrb[0].mxu0 }
  0xeb   : > { %v481_v20 = vadd.f32 %v1209_v19, %v1449_v18  ;;  %v472_v21 = vpop.f32.mrb[1].mxu0 }
  0xec   : > { %v473_v22 = vadd.f32 %v1449_v18, %v472_v21  ;;  %v1210_v23 = vpop.f32.mrb[2].mxu0  ;;  %v1225_v42 = vpop.f32.mrb[0].mxu1 }
  0xed   : > { %v1158_v24 = vpack.c.bf16 %v481_v20, %v481_v20  ;;  %v484_v25 = vadd.f32 %v1210_v23, %v1449_v18  ;;  %v475_v26 = vpop.f32.mrb[3].mxu0  ;;  %v673_v30 = vmul.f32 %v481_v20, %v481_v20  ;;  %v603_v38 = vsel %vm599_vm3, %v481_v20, 0.0  ;;  %v536_v47 = vpop.f32.mrb[1].mxu1 }
  0xee   : > { %v671_v27 = vmul.f32 %v473_v22, %v473_v22  ;;  %v1156_v28 = vpack.c.bf16 %v473_v22, %v473_v22  ;;  %v476_v29 = vadd.f32 %v1449_v18, %v475_v26  ;;  %v600_v32 = vsel %vm599_vm3, %v473_v22, 0.0  ;;  %v1478_v51 = vpop.f32.mrb[2].mxu1 }
  0xef   : > { %908 = vst.msk [vmem:[%s1457_s9 + $0x8] sm:$0xf] %vm905_vm2, %v1158_v24  ;;  %v1159_v31 = vpack.c.bf16 %v484_v25, %v484_v25  ;;  %v674_v36 = vmul.f32 %v484_v25, %v484_v25  ;;  %v706_v48 = vsel %vm599_vm3, %v673_v30, 0.0  ;;  %v605_v52 = vsel %vm599_vm3, %v484_v25, 0.0  ;;  %v1482_v57 = vpop.f32.mrb[3].mxu1 }
  0xf0   : > { %906 = vst.msk [vmem:[%s1457_s9] sm:$0xf] %vm905_vm2, %v1156_v28  ;;  %v601_v33 = vsel %vm599_vm3, %v476_v29, 0.0  ;;  %v672_v34 = vmul.f32 %v476_v29, %v476_v29  ;;  %v1157_v35 = vpack.c.bf16 %v476_v29, %v476_v29  ;;  %v703_v39 = vsel %vm599_vm3, %v671_v27, 0.0 }
  0xf1   : > { %909 = vst.msk [vmem:[%s1457_s9 + $0xc] sm:$0xf] %vm905_vm2, %v1159_v31  ;;  %v602_v37 = vadd.f32 %v601_v33, %v600_v32  ;;  %v708_v53 = vsel %vm599_vm3, %v674_v36, 0.0  ;;  %v1490_v1 = vadd.f32 %v1225_v42, %v1449_v18  ;;  %v1504_v16 = vadd.f32 %v1449_v18, %v536_v47 }
  0xf2   : > { %v704_v40 = vsel %vm599_vm3, %v672_v34, 0.0  ;;  %907 = vst.msk [vmem:[%s1457_s9 + $0x4] sm:$0xf] %vm905_vm2, %v1157_v35  ;;  %v1213_v41 = vpop.f32.mrb[4].mxu0 }
  0xf3   : > { %v604_v43 = vadd.f32 %v603_v38, %v602_v37  ;;  %v705_v44 = vadd.f32 %v704_v40, %v703_v39  ;;  %v497_v45 = vadd.f32 %v1213_v41, %v1449_v18  ;;  %v488_v46 = vpop.f32.mrb[5].mxu0  ;;  %v1174_v15 = vpack.c.bf16 %v1490_v1, %v1490_v1 }
  0xf4   : > { %v489_v49 = vadd.f32 %v1449_v18, %v488_v46  ;;  %v1214_v50 = vpop.f32.mrb[6].mxu0  ;;  %v1496_v11 = vpop.f32.mrb[4].mxu1  ;;  %v1172_v41 = vpack.c.bf16 %v1504_v16, %v1504_v16 }
  0xf5   : > { %v707_v54 = vadd.f32 %v706_v48, %v705_v44  ;;  %v1162_v55 = vpack.c.bf16 %v497_v45, %v497_v45  ;;  %v491_v56 = vpop.f32.mrb[7].mxu0  ;;  %v606_v58 = vadd.f32 %v605_v52, %v604_v43  ;;  %v500_v63 = vadd.f32 %v1214_v50, %v1449_v18  ;;  %v1506_v17 = vpop.f32.mrb[5].mxu1  ;;  %924 = vst.msk [vmem:[%s1457_s9 + $0x48] sm:$0xf] %vm905_vm2, %v1174_v15 }
  0xf6   : > { %v607_v59 = vsel %vm599_vm3, %v489_v49, 0.0  ;;  %v675_v60 = vmul.f32 %v489_v49, %v489_v49  ;;  %v1160_v61 = vpack.c.bf16 %v489_v49, %v489_v49  ;;  %v492_v0 = vadd.f32 %v1449_v18, %v491_v56  ;;  %v1513_v24 = vpop.f32.mrb[6].mxu1  ;;  %922 = vst.msk [vmem:[%s1457_s9 + $0x40] sm:$0xf] %vm905_vm2, %v1172_v41 }
  0xf7   : > { %912 = vst.msk [vmem:[%s1457_s9 + $0x18] sm:$0xf] %vm905_vm2, %v1162_v55  ;;  %v709_v62 = vadd.f32 %v708_v53, %v707_v54  ;;  %v608_v2 = vadd.f32 %v607_v59, %v606_v58  ;;  %v677_v4 = vmul.f32 %v497_v45, %v497_v45  ;;  %v1163_v6 = vpack.c.bf16 %v500_v63, %v500_v63  ;;  %v1519_v30 = vpop.f32.mrb[7].mxu1 }
  0xf8   : > { %v710_v3 = vsel %vm599_vm3, %v675_v60, 0.0  ;;  %910 = vst.msk [vmem:[%s1457_s9 + $0x10] sm:$0xf] %vm905_vm2, %v1160_v61  ;;  %v609_v7 = vsel %vm599_vm3, %v492_v0, 0.0  ;;  %v676_v8 = vmul.f32 %v492_v0, %v492_v0  ;;  %v1161_v9 = vpack.c.bf16 %v492_v0, %v492_v0 }
  0xf9   : > { %v711_v5 = vadd.f32 %v710_v3, %v709_v62  ;;  %913 = vst.msk [vmem:[%s1457_s9 + $0x1c] sm:$0xf] %vm905_vm2, %v1163_v6  ;;  %v610_v12 = vadd.f32 %v609_v7, %v608_v2  ;;  %v611_v19 = vsel %vm599_vm3, %v497_v45, 0.0  ;;  %v678_v20 = vmul.f32 %v500_v63, %v500_v63 }
  0xfa   : > { %v1217_v10 = vpop.f32.mrb[8].mxu0  ;;  %v712_v21 = vsel %vm599_vm3, %v676_v8, 0.0  ;;  %911 = vst.msk [vmem:[%s1457_s9 + $0x14] sm:$0xf] %vm905_vm2, %v1161_v9  ;;  %v714_v25 = vsel %vm599_vm3, %v677_v4, 0.0  ;;  %v613_v26 = vsel %vm599_vm3, %v500_v63, 0.0 }
  0xfb   : > { %v513_v13 = vadd.f32 %v1217_v10, %v1449_v18  ;;  %v504_v14 = vpop.f32.mrb[9].mxu0  ;;  %v612_v27 = vadd.f32 %v611_v19, %v610_v12  ;;  %v713_v28 = vadd.f32 %v712_v21, %v711_v5  ;;  %v716_v38 = vsel %vm599_vm3, %v678_v20, 0.0 }
  0xfc   : > { %v505_v22 = vadd.f32 %v1449_v18, %v504_v14  ;;  %v1218_v23 = vpop.f32.mrb[10].mxu0  ;;  %v1535_v50 = vpop.f32.mrb[8].mxu1  ;;  %v1564_v21 = vadd.f32 %v1478_v51, %v1449_v18  ;;  %v631_v51 = vsel %vm599_vm3, %v1504_v16, 0.0 }
  0xfd   : > { %v507_v29 = vpop.f32.mrb[11].mxu0  ;;  %v1166_v31 = vpack.c.bf16 %v513_v13, %v513_v13  ;;  %v715_v35 = vadd.f32 %v714_v25, %v713_v28  ;;  %v614_v36 = vadd.f32 %v613_v26, %v612_v27  ;;  %v516_v37 = vadd.f32 %v1218_v23, %v1449_v18  ;;  %v1538_v56 = vpop.f32.mrb[9].mxu1 }
  0xfe   : > { %v615_v32 = vsel %vm599_vm3, %v505_v22, 0.0  ;;  %v679_v33 = vmul.f32 %v505_v22, %v505_v22  ;;  %v1164_v34 = vpack.c.bf16 %v505_v22, %v505_v22  ;;  %v508_v40 = vadd.f32 %v1449_v18, %v507_v29  ;;  %v1547_v63 = vpop.f32.mrb[10].mxu1 }
  0xff   : > { %916 = vst.msk [vmem:[%s1457_s9 + $0x28] sm:$0xf] %vm905_vm2, %v1166_v31  ;;  %v681_v42 = vmul.f32 %v513_v13, %v513_v13  ;;  %v616_v43 = vadd.f32 %v615_v32, %v614_v36  ;;  %v717_v44 = vadd.f32 %v716_v38, %v715_v35  ;;  %v1167_v45 = vpack.c.bf16 %v516_v37, %v516_v37  ;;  %v1551_v6 = vpop.f32.mrb[11].mxu1 }
 0x100   : > { %v718_v39 = vsel %vm599_vm3, %v679_v33, 0.0  ;;  %914 = vst.msk [vmem:[%s1457_s9 + $0x20] sm:$0xf] %vm905_vm2, %v1164_v34  ;;  %v617_v46 = vsel %vm599_vm3, %v508_v40, 0.0  ;;  %v680_v47 = vmul.f32 %v508_v40, %v508_v40  ;;  %v1165_v48 = vpack.c.bf16 %v508_v40, %v508_v40 }
 0x101   : > { %v719_v52 = vadd.f32 %v718_v39, %v717_v44  ;;  %v618_v53 = vadd.f32 %v617_v46, %v616_v43  ;;  %v619_v58 = vsel %vm599_vm3, %v513_v13, 0.0  ;;  %v682_v59 = vmul.f32 %v516_v37, %v516_v37  ;;  %917 = vst.msk [vmem:[%s1457_s9 + $0x2c] sm:$0xf] %vm905_vm2, %v1167_v45 }
 0x102   : > { %v1221_v49 = vpop.f32.mrb[12].mxu0  ;;  %v720_v60 = vsel %vm599_vm3, %v680_v47, 0.0  ;;  %915 = vst.msk [vmem:[%s1457_s9 + $0x24] sm:$0xf] %vm905_vm2, %v1165_v48  ;;  %v722_v0 = vsel %vm599_vm3, %v681_v42, 0.0  ;;  %v621_v2 = vsel %vm599_vm3, %v516_v37, 0.0  ;;  %v540_v26 = vadd.f32 %v1449_v18, %v1482_v57 }
 0x103   : > { %v529_v54 = vadd.f32 %v1221_v49, %v1449_v18  ;;  %v520_v55 = vpop.f32.mrb[13].mxu0  ;;  %v620_v3 = vadd.f32 %v619_v58, %v618_v53  ;;  %v721_v4 = vadd.f32 %v720_v60, %v719_v52  ;;  %v724_v15 = vsel %vm599_vm3, %v682_v59, 0.0 }
 0x104   : > { %v521_v61 = vadd.f32 %v1449_v18, %v520_v55  ;;  %v1222_v62 = vpop.f32.mrb[14].mxu0  ;;  %v1569_v32 = vpop.f32.mrb[12].mxu1  ;;  %v687_v35 = vmul.f32 %v1504_v16, %v1504_v16  ;;  %v1175_v39 = vpack.c.bf16 %v1564_v21, %v1564_v21  ;;  %v1173_v42 = vpack.c.bf16 %v540_v26, %v540_v26 }
 0x105   : > { %v523_v5 = vpop.f32.mrb[15].mxu0  ;;  %v1170_v7 = vpack.c.bf16 %v529_v54, %v529_v54  ;;  %v723_v12 = vadd.f32 %v722_v0, %v721_v4  ;;  %v622_v13 = vadd.f32 %v621_v2, %v620_v3  ;;  %v532_v14 = vadd.f32 %v1222_v62, %v1449_v18  ;;  %v1575_v36 = vpop.f32.mrb[13].mxu1 }
 0x106   : > { %v623_v8 = vsel %vm599_vm3, %v521_v61, 0.0  ;;  %v683_v9 = vmul.f32 %v521_v61, %v521_v61  ;;  %v1168_v10 = vpack.c.bf16 %v521_v61, %v521_v61  ;;  %v524_v20 = vadd.f32 %v1449_v18, %v523_v5  ;;  %v1585_v40 = vpop.f32.mrb[14].mxu1  ;;  %925 = vst.msk [vmem:[%s1457_s9 + $0x4c] sm:$0xf] %vm905_vm2, %v1175_v39  ;;  %923 = vst.msk [vmem:[%s1457_s9 + $0x44] sm:$0xf] %vm905_vm2, %v1173_v42 }
 0x107   : > { %920 = vst.msk [vmem:[%s1457_s9 + $0x38] sm:$0xf] %vm905_vm2, %v1170_v7  ;;  %v685_v22 = vmul.f32 %v529_v54, %v529_v54  ;;  %v624_v23 = vadd.f32 %v623_v8, %v622_v13  ;;  %v725_v25 = vadd.f32 %v724_v15, %v723_v12  ;;  %v1171_v27 = vpack.c.bf16 %v532_v14, %v532_v14  ;;  %v1589_v44 = vpop.f32.mrb[15].mxu1 }
 0x108   : > { %v726_v19 = vsel %vm599_vm3, %v683_v9, 0.0  ;;  %918 = vst.msk [vmem:[%s1457_s9 + $0x30] sm:$0xf] %vm905_vm2, %v1168_v10  ;;  %v625_v28 = vsel %vm599_vm3, %v524_v20, 0.0  ;;  %v684_v29 = vmul.f32 %v524_v20, %v524_v20  ;;  %v1169_v31 = vpack.c.bf16 %v524_v20, %v524_v20 }
 0x109   : > { %v727_v33 = vadd.f32 %v726_v19, %v725_v25  ;;  %v626_v34 = vadd.f32 %v625_v28, %v624_v23  ;;  %v627_v57 = vsel %vm599_vm3, %v529_v54, 0.0  ;;  %v686_v37 = vmul.f32 %v532_v14, %v532_v14  ;;  %921 = vst.msk [vmem:[%s1457_s9 + $0x3c] sm:$0xf] %vm905_vm2, %v1171_v27 }
 0x10a   : > { %v728_v38 = vsel %vm599_vm3, %v684_v29, 0.0  ;;  %919 = vst.msk [vmem:[%s1457_s9 + $0x34] sm:$0xf] %vm905_vm2, %v1169_v31  ;;  %v561_v43 = vadd.f32 %v1496_v11, %v1449_v18  ;;  %v730_v45 = vsel %vm599_vm3, %v685_v22, 0.0  ;;  %v629_v46 = vsel %vm599_vm3, %v532_v14, 0.0 }
 0x10b   : > { %v628_v41 = vadd.f32 %v627_v57, %v626_v34  ;;  %v729_v16 = vadd.f32 %v728_v38, %v727_v33  ;;  %v553_v47 = vadd.f32 %v1449_v18, %v1506_v17  ;;  %v1599_v48 = vadd.f32 %v1513_v24, %v1449_v18 }
 0x10c   : > { %v688_v11 = vmul.f32 %v540_v26, %v540_v26  ;;  %v556_v53 = vadd.f32 %v1449_v18, %v1519_v30  ;;  %v732_v54 = vsel %vm599_vm3, %v686_v37, 0.0  ;;  %v734_v55 = vsel %vm599_vm3, %v687_v35, 0.0 }
 0x10d   : > { %v731_v49 = vadd.f32 %v730_v45, %v729_v16  ;;  %v630_v52 = vadd.f32 %v629_v46, %v628_v41  ;;  %v1178_v58 = vpack.c.bf16 %v561_v43, %v561_v43  ;;  %v1176_v17 = vpack.c.bf16 %v553_v47, %v553_v47 }
 0x10e   : > { %v689_v24 = vmul.f32 %v1490_v1, %v1490_v1  ;;  %v635_v61 = vsel %vm599_vm3, %v1490_v1, 0.0  ;;  %v690_v62 = vmul.f32 %v1564_v21, %v1564_v21  ;;  %v633_v30 = vsel %vm599_vm3, %v540_v26, 0.0 }
 0x10f   : > { %v632_v59 = vadd.f32 %v631_v51, %v630_v52  ;;  %v733_v60 = vadd.f32 %v732_v54, %v731_v49  ;;  %928 = vst.msk [vmem:[%s1457_s9 + $0x58] sm:$0xf] %vm905_vm2, %v1178_v58  ;;  %926 = vst.msk [vmem:[%s1457_s9 + $0x50] sm:$0xf] %vm905_vm2, %v1176_v17  ;;  %v1179_v0 = vpack.c.bf16 %v1599_v48, %v1599_v48  ;;  %v736_v4 = vsel %vm599_vm3, %v688_v11, 0.0 }
 0x110   : > { %v1177_v5 = vpack.c.bf16 %v556_v53, %v556_v53  ;;  %v691_v7 = vmul.f32 %v553_v47, %v553_v47  ;;  %v577_v1 = vadd.f32 %v1535_v50, %v1449_v18  ;;  %v569_v8 = vadd.f32 %v1449_v18, %v1538_v56 }
 0x111   : > { %v735_v2 = vadd.f32 %v734_v55, %v733_v60  ;;  %v634_v3 = vadd.f32 %v633_v30, %v632_v59  ;;  %929 = vst.msk [vmem:[%s1457_s9 + $0x5c] sm:$0xf] %vm905_vm2, %v1179_v0  ;;  %v1629_v9 = vadd.f32 %v1547_v63, %v1449_v18  ;;  %v738_v10 = vsel %vm599_vm3, %v689_v24, 0.0 }
 0x112   : > { %927 = vst.msk [vmem:[%s1457_s9 + $0x54] sm:$0xf] %vm905_vm2, %v1177_v5  ;;  %v637_v14 = vsel %vm599_vm3, %v1564_v21, 0.0  ;;  %v639_v50 = vsel %vm599_vm3, %v553_v47, 0.0  ;;  %v1182_v15 = vpack.c.bf16 %v577_v1, %v577_v1  ;;  %v572_v56 = vadd.f32 %v1449_v18, %v1551_v6 }
 0x113   : > { %v636_v12 = vadd.f32 %v635_v61, %v634_v3  ;;  %v737_v13 = vadd.f32 %v736_v4, %v735_v2  ;;  %v1180_v20 = vpack.c.bf16 %v569_v8, %v569_v8  ;;  %v740_v22 = vsel %vm599_vm3, %v690_v62, 0.0 }
 0x114   : > { %v742_v23 = vsel %vm599_vm3, %v691_v7, 0.0  ;;  %v692_v25 = vmul.f32 %v556_v53, %v556_v53  ;;  %932 = vst.msk [vmem:[%s1457_s9 + $0x68] sm:$0xf] %vm905_vm2, %v1182_v15  ;;  %v1183_v21 = vpack.c.bf16 %v1629_v9, %v1629_v9  ;;  %v643_v26 = vsel %vm599_vm3, %v561_v43, 0.0 }
 0x115   : > { %v739_v19 = vadd.f32 %v738_v10, %v737_v13  ;;  %v638_v63 = vadd.f32 %v637_v14, %v636_v12  ;;  %930 = vst.msk [vmem:[%s1457_s9 + $0x60] sm:$0xf] %vm905_vm2, %v1180_v20  ;;  %v693_v6 = vmul.f32 %v561_v43, %v561_v43  ;;  %v641_v29 = vsel %vm599_vm3, %v556_v53, 0.0 }
 0x116   : > { %933 = vst.msk [vmem:[%s1457_s9 + $0x6c] sm:$0xf] %vm905_vm2, %v1183_v21  ;;  %v1181_v31 = vpack.c.bf16 %v572_v56, %v572_v56  ;;  %v593_v33 = vadd.f32 %v1569_v32, %v1449_v18  ;;  %v585_v35 = vadd.f32 %v1449_v18, %v1575_v36  ;;  %v596_v57 = vadd.f32 %v1585_v40, %v1449_v18 }
 0x117   : > { %v640_v27 = vadd.f32 %v639_v50, %v638_v63  ;;  %v741_v28 = vadd.f32 %v740_v22, %v739_v19  ;;  %v694_v37 = vmul.f32 %v1599_v48, %v1599_v48  ;;  %v744_v38 = vsel %vm599_vm3, %v692_v25, 0.0 }
 0x118   : > { %v695_v39 = vmul.f32 %v569_v8, %v569_v8  ;;  %931 = vst.msk [vmem:[%s1457_s9 + $0x64] sm:$0xf] %vm905_vm2, %v1181_v31  ;;  %v1186_v41 = vpack.c.bf16 %v593_v33, %v593_v33  ;;  %v746_v42 = vsel %vm599_vm3, %v693_v6, 0.0  ;;  %v645_v36 = vsel %vm599_vm3, %v1599_v48, 0.0 }
 0x119   : > { %v743_v34 = vadd.f32 %v742_v23, %v741_v28  ;;  %v642_v51 = vadd.f32 %v641_v29, %v640_v27  ;;  %v647_v40 = vsel %vm599_vm3, %v569_v8, 0.0  ;;  %v1184_v43 = vpack.c.bf16 %v585_v35, %v585_v35 }
 0x11a   : > { %936 = vst.msk [vmem:[%s1457_s9 + $0x78] sm:$0xf] %vm905_vm2, %v1186_v41  ;;  %v1187_v47 = vpack.c.bf16 %v596_v57, %v596_v57  ;;  %v748_v49 = vsel %vm599_vm3, %v694_v37, 0.0  ;;  %v750_v52 = vsel %vm599_vm3, %v695_v39, 0.0  ;;  %v696_v11 = vmul.f32 %v572_v56, %v572_v56 }
 0x11b   : > { %v644_v16 = vadd.f32 %v643_v26, %v642_v51  ;;  %v745_v32 = vadd.f32 %v744_v38, %v743_v34  ;;  %934 = vst.msk [vmem:[%s1457_s9 + $0x70] sm:$0xf] %vm905_vm2, %v1184_v43  ;;  %v588_v53 = vadd.f32 %v1449_v18, %v1589_v44  ;;  %v697_v55 = vmul.f32 %v577_v1, %v577_v1 }
 0x11c   : > { %937 = vst.msk [vmem:[%s1457_s9 + $0x7c] sm:$0xf] %vm905_vm2, %v1187_v47  ;;  %v649_v58 = vsel %vm599_vm3, %v572_v56, 0.0  ;;  %v651_v60 = vsel %vm599_vm3, %v577_v1, 0.0  ;;  %v698_v61 = vmul.f32 %v1629_v9, %v1629_v9  ;;  %v752_v62 = vsel %vm599_vm3, %v696_v11, 0.0 }
 0x11d   : > { %v747_v45 = vadd.f32 %v746_v42, %v745_v32  ;;  %v646_v46 = vadd.f32 %v645_v36, %v644_v16  ;;  %v1185_v17 = vpack.c.bf16 %v588_v53, %v588_v53  ;;  %v699_v30 = vmul.f32 %v585_v35, %v585_v35 }
 0x11e   : > { %v754_v0 = vsel %vm599_vm3, %v697_v55, 0.0  ;;  %v653_v2 = vsel %vm599_vm3, %v1629_v9, 0.0  ;;  %v655_v3 = vsel %vm599_vm3, %v585_v35, 0.0  ;;  %v756_v7 = vsel %vm599_vm3, %v698_v61, 0.0 }
 0x11f   : > { %v648_v48 = vadd.f32 %v647_v40, %v646_v46  ;;  %v749_v54 = vadd.f32 %v748_v49, %v747_v45  ;;  %935 = vst.msk [vmem:[%s1457_s9 + $0x74] sm:$0xf] %vm905_vm2, %v1185_v17  ;;  %v758_v1 = vsel %vm599_vm3, %v699_v30, 0.0  ;;  %v700_v8 = vmul.f32 %v588_v53, %v588_v53 }
 0x120   : > { %v701_v13 = vmul.f32 %v593_v33, %v593_v33  ;;  %v657_v14 = vsel %vm599_vm3, %v588_v53, 0.0  ;;  %v659_v9 = vsel %vm599_vm3, %v593_v33, 0.0  ;;  %v702_v56 = vmul.f32 %v596_v57, %v596_v57 }
 0x121   : > { %v751_v24 = vadd.f32 %v750_v52, %v749_v54  ;;  %v650_v59 = vadd.f32 %v649_v58, %v648_v48  ;;  %v760_v19 = vsel %vm599_vm3, %v700_v8, 0.0  ;;  %v661_v23 = vsel %vm599_vm3, %v596_v57, 0.0 }
 0x122   : > { %v762_v22 = vsel %vm599_vm3, %v701_v13, 0.0  ;;  %v764_v26 = vsel %vm599_vm3, %v702_v56, 0.0 }
 0x123   : > { %v652_v18 = vadd.f32 %v651_v60, %v650_v59  ;;  %v753_v44 = vadd.f32 %v752_v62, %v751_v24 }
 0x125   : > { %v755_v4 = vadd.f32 %v754_v0, %v753_v44  ;;  %v654_v5 = vadd.f32 %v653_v2, %v652_v18 }
 0x127   : > { %v656_v10 = vadd.f32 %v655_v3, %v654_v5  ;;  %v757_v12 = vadd.f32 %v756_v7, %v755_v4 }
 0x129   : > { %v759_v50 = vadd.f32 %v758_v1, %v757_v12  ;;  %v658_v15 = vadd.f32 %v657_v14, %v656_v10 }
 0x12b   : > { %v660_v63 = vadd.f32 %v659_v9, %v658_v15  ;;  %v761_v20 = vadd.f32 %v760_v19, %v759_v50 }
 0x12d   : > { %v662_v25 = vadd.f32 %v661_v23, %v660_v63  ;;  %v763_v21 = vadd.f32 %v762_v22, %v761_v20 }
 0x12f   : > { %v663_v27 = vrot.slane %v662_v25, 4  ;;  %v765_v28 = vadd.f32 %v764_v26, %v763_v21 }
 0x131   : > { %v664_v6 = vadd.f32 %v663_v27, %v662_v25  ;;  %v766_v29 = vrot.slane %v765_v28, 4 }
 0x133   : > { %v665_v31 = vrot.slane %v664_v6, 2  ;;  %v767_v33 = vadd.f32 %v766_v29, %v765_v28 }
 0x135   : > { %v666_v34 = vadd.f32 %v665_v31, %v664_v6  ;;  %v768_v51 = vrot.slane %v767_v33, 2 }
 0x137   : > { %v667_v35 = vrot.slane %v666_v34, 1  ;;  %v769_v37 = vadd.f32 %v768_v51, %v767_v33 }
 0x139   : > { %v668_v38 = vadd.f32 %v667_v35, %v666_v34  ;;  %v770_v57 = vrot.slane %v769_v37, 1 }
 0x13b   : > { %v771_v39 = vadd.f32 %v770_v57, %v769_v37  ;;  %v670_v41 = vmul.f32 0.00390625, %v668_v38 }
 0x13d   : > { %v772_v16 = vmul.f32 0.00390625, %v771_v39 }
 0x13f   : > { %v774_v32 = vsel %vm773_vm4, %v670_v41, %v772_v16 }
 0x140   : > { %776 = vst.msk [vmem:[%s257_s22] sm:$0x3] %vm775_vm5, %v774_v32 }
 0x141 PF: > { %s15_s19 = sadd.s32 1, %s1338_s19   ;;  %s1721_s15 = smov %s1330_s17 }
 0x142   : > { %p12_p8 = scmp.ge.s32.totalorder %s15_s19, 6   ;;  %s1722_s16 = smov %s1334_s18 }
 0x143   : > { %s1723_s17 = smov %s1726_s20  ;;  %s1724_s18 = smov %s1730_s21 }
 0x144   :  { %14 = sbr.rel (!%p12_p8) target bundleno = 3 (0x3), region = 74 }

// kernel: squeeze.21
= control target key start
LH: loop header
LB: loop body
LE: loop exit
PB: predicated region body
PF: predicated region fallthrough
CT: control target
= control target key end

     0   :  { %vm7_vm0 = vcmask 31744   ;;  %s48_s0 = inlined_call_operand.vmem [shape: f32[2,8], index: 0, kind: input, shape index: {}]   ;;  %s49_s1 = inlined_call_operand.vmem [shape: f32[2,2,4], index: 1, kind: output, shape index: {}]  }
   0x1   :  { %v4_v0 = vld [vmem:[%s48_s0] sm:$0x3]  ;;  %s28_s0 = smov 124  }
   0x2   :  { %5 = vst [vmem:[#allocation1] sm:$0x3] %v4_v0 }
   0x9   :  { %v9_v1 = vld [vmem:[#allocation1] sm:$0x3]  }
   0xa   :  { %v6_v2 = vld [vmem:[#allocation1] sm:$0x3]   ;;  %10 = vrot.lane.b32.xlu0 %v9_v1, %s28_s0 }
   0xb   :  { %8 = vst.msk [vmem:[#allocation0] ss:$8 sm:$0x3] %vm7_vm0, %v6_v2  }
  0x7c   :  { %v11_v3 = vpop.permute.xlu0 %10  }
  0x7d   :  { %14 = vst.msk [vmem:[#allocation0 + $0x1] ss:$8 sm:$0x3] %vm7_vm0, %v11_v3  }
  0x84   :  { %v18_v4 = vld [vmem:[#allocation0] sm:$0x3]  ;;  %v22_v5 = vld [vmem:[#allocation0 + $0x8] sm:$0x3] }
  0x85   :  { %20 = vst [vmem:[%s49_s1] sm:$0x3] %v18_v4  ;;  %26 = vst [vmem:[%s49_s1 + $0x2] sm:$0x3] %v22_v5 }

// kernel: dsc_conv_forward.11
= control target key start
LH: loop header
LB: loop body
LE: loop exit
PB: predicated region body
PF: predicated region fallthrough
CT: control target
= control target key end

     0   :  { %s491_s12 = smov 0   ;;  %s493_s13 = smov 0   ;;  %s548_s0 = inlined_call_operand.vmem [shape: bf16[2,32,128], index: 0, kind: input, shape index: {}]   ;;  %s549_s1 = inlined_call_operand.vmem [shape: f32[2,1,128], index: 1, kind: input, shape index: {}]   ;;  %s550_s2 = inlined_call_operand.vmem [shape: f32[2,1,128], index: 2, kind: input, shape index: {}]   ;;  %s551_s3 = inlined_call_operand.vmem [shape: f32[2,32,128], index: 3, kind: output, shape index: {}]  }
   0x1   :  { %s495_s14 = smov 0   ;;  %s497_s15 = smov 0  }
   0x2   :  { %s499_s16 = smov 0  }
   0x3 LB: > { %s22_s17 = sadd.s32 1, %s461_s14  ;;  %s25_s18 = sadd.s32 1, %s465_s15  ;;  %s469_s16 = sphi %s499_s16, %s13_s16   ;;  %s465_s15 = sphi %s497_s15, %s555_s15   ;;  %s461_s14 = sphi %s495_s14, %s554_s14   ;;  %s457_s13 = sphi %s493_s13, %s553_s13   ;;  %s453_s12 = sphi %s491_s12, %s552_s12  }
   0x4   : > { %p23_p0 = scmp.ge.s32.totalorder %s22_s17, 2  ;;  %p376_p1 = scmp.ge.s32.totalorder %s469_s16, 1 }
   0x5   : > { %p174_p2 = scmp.lt.s32.totalorder %s469_s16, 5 }
   0x6   : > { %s557_s17 = smov (%p23_p0, %s22_s17), 0  ;;  %s559_s18 = smov (!%p23_p0, %s25_s18), %s465_s15 }
   0x7   : > { %p175_p3 = pnand %p376_p1, %p174_p2  ;;  %p27_p4 = scmp.ge.s32.totalorder %s559_s18, 2 }
   0x8   : > { %s377_s19 = sshll.u32 (!%p175_p3), %s453_s12, 1  ;;  %p213_p5 = scmp.lt.s32.totalorder (!%p175_p3), %s457_s13, 1 }
   0x9   : > { %s561_s18 = smov (%p27_p4, %s559_s18), 0  ;;  %178 = sbr.rel (%p175_p3) target bundleno = 31 (0x1f), region = 32 }
   0xa   : > { %p215_p6 = scmp.lt.s32.totalorder (!%p175_p3), %s377_s19, 3 }
  0x10   : > { %s563_s13 = smov (!%p213_p5, %s457_s13), 1  ;;  %s565_s19 = smov (!%p215_p6, %s377_s19), 3 }
  0x11   : > { %s378_s20 = sshll.u32 %s563_s13, 2  ;;  %s224_s24 = scalar_lea.vmem %s549_s1, %s563_s13 }
  0x12   : > { %s218_s21 = sadd.s32 %s378_s20, %s565_s19  ;;  %s227_s4 = scalar_lea.vmem %s550_s2, %s563_s13  ;;  %v383_v1 = vld [vmem:[%s224_s24] ss:$0 sm:$0xff] }
  0x13   : > { %s379_s25 = sshll.u32 %s218_s21, 2  ;;  %v384_v4 = vld [vmem:[%s227_s4] ss:$0 sm:$0xff]  ;;  %s382_s5 = sshll.u32 %s218_s21, 3 }
  0x14   : > { %s220_s28 = scalar_lea.vmem %s548_s0, %s379_s25  ;;  %s236_s8 = scalar_lea.vmem %s551_s3, %s382_s5 }
  0x15   : > { %v388_v0 = vld [vmem:[%s220_s28] sm:$0xff]  }
  0x16   : > { %v389_v2 = vunpack.c.l.bf16 %v388_v0  ;;  %v390_v3 = vunpack.c.h.bf16 %v388_v0 }
  0x18   : > { %v249_v5 = vmul.f32 %v389_v2, %v383_v1  ;;  %v250_v6 = vmul.f32 %v390_v3, %v383_v1 }
  0x1a   : > { %v258_v7 = vadd.f32 %v384_v4, %v249_v5  ;;  %v259_v8 = vadd.f32 %v384_v4, %v250_v6 }
  0x1c   : > { %v260_v9 = vmax.f32 %v258_v7, 0.0  ;;  %v261_v10 = vmax.f32 %v259_v8, 0.0 }
  0x1e   : > { %262 = vst [vmem:[%s236_s8] sm:$0xff] %v260_v9  ;;  %263 = vst [vmem:[%s236_s8 + $0x8] sm:$0xff] %v261_v10 }
  0x1f PF: > { %s13_s16 = sadd.s32 1, %s469_s16   ;;  %s552_s12 = smov %s461_s14 }
  0x20   : > { %p10_p7 = scmp.ge.s32.totalorder %s13_s16, 6   ;;  %s553_s13 = smov %s465_s15 }
  0x21   : > { %s554_s14 = smov %s557_s17  ;;  %s555_s15 = smov %s561_s18 }
  0x22   :  { %12 = sbr.rel (!%p10_p7) target bundleno = 3 (0x3), region = 68 }

</bundles_post_ra>
